<compile_context>
chip_gen: v6e
topology: v6e:2x2x1
jax: 0.10.0
libtpu: 0.0.40
codegen_flags: <defaults>
</compile_context>

<pallas_src>
import functools

import jax
import jax.numpy as jnp
from jax import lax
from jax.experimental import pallas as pl
from jax.experimental.pallas import tpu as pltpu


# ----------------------------------------------------------------------------
# Fused kernel: one batch element per grid step, whole network VMEM-resident.
# ----------------------------------------------------------------------------
def _kcnn_fused_kernel(xcols_ref, w1_ref, w234_ref, scale_ref, shift_ref,
                       wcls_ref, bcls_ref, o_ref, *, H, W, C, n_layers):
    f32 = jnp.float32

    def bn_relu(acc, layer):
        # acc: (rows, C) f32 ; folded BN scale/shift (conv bias included in shift).
        scale = scale_ref[layer:layer + 1, :]            # (1, C)
        shift = shift_ref[layer:layer + 1, :]            # (1, C)
        return jnp.maximum(acc * scale + shift, 0.0)

    def pool2x2(y, h, w):
        # y: (h, w, C) -> (h//2, w//2, C), 2x2 max pool stride 2 (static slices only).
        y = y.reshape(h // 2, 2, w, C)
        y = jnp.maximum(y[:, 0, :, :], y[:, 1, :, :])
        y = y.reshape(h // 2, w // 2, 2, C)
        return jnp.maximum(y[:, :, 0, :], y[:, :, 1, :])

    # ---- layer 1: input pre-im2col'd in the wrapper; one (H*W, K1) @ (K1, C) matmul --
    patches = xcols_ref[0]                                              # (H*W, K1) bf16
    acc = jnp.dot(patches, w1_ref[...], preferred_element_type=f32)     # (H*W, C) f32
    act = pool2x2(bn_relu(acc, 0).reshape(H, W, C), H, W)               # (H/2, W/2, C)

    # ---- layers 2..n_layers: pad in VMEM, im2col -> single K = 9*C matmul each ------
    h, w = H // 2, W // 2
    for layer in range(1, n_layers):
        zrow = jnp.zeros((1, w, C), f32)
        zcol = jnp.zeros((h + 2, 1, C), f32)
        xp = jnp.concatenate([zrow, act, zrow], axis=0)                 # (h+2, w,   C)
        xp = jnp.concatenate([zcol, xp, zcol], axis=1)                  # (h+2, w+2, C)
        cols = [xp[dh:dh + h, dw:dw + w, :].reshape(h * w, C)
                for dh in range(3) for dw in range(3)]
        patches = jnp.concatenate(cols, axis=-1).astype(jnp.bfloat16)   # (h*w, 9*C)
        acc = jnp.dot(patches, w234_ref[layer - 1],
                      preferred_element_type=f32)                       # (h*w, C)
        act = pool2x2(bn_relu(acc, layer).reshape(h, w, C), h, w)
        h //= 2
        w //= 2

    # ---- classifier head: flatten in NHWC order (wcls rows pre-permuted to match) ---
    flat = act.reshape(1, h * w * C).astype(jnp.bfloat16)               # (1, F)
    logits = jnp.dot(flat, wcls_ref[...], preferred_element_type=f32) + bcls_ref[...]
    o_ref[...] = logits[None].astype(o_ref.dtype)                       # (1, 1, n_cls)


# ----------------------------------------------------------------------------
# Wrappers
# ----------------------------------------------------------------------------
def _kcnn_fused_call(x_cols, kp, *, H, W):
    N, HW, K1 = x_cols.shape
    L, C = kp["scale"].shape
    F, n_classes = kp["wcls"].shape
    kernel = functools.partial(_kcnn_fused_kernel, H=H, W=W, C=C, n_layers=L)
    out = pl.pallas_call(
        kernel,
        out_shape=jax.ShapeDtypeStruct((N, 1, n_classes), jnp.float32),
        grid=(N,),
        in_specs=[
            pl.BlockSpec((1, HW, K1), lambda n: (n, 0, 0)),
            pl.BlockSpec((K1, C), lambda n: (0, 0)),
            pl.BlockSpec(kp["w234"].shape, lambda n: (0, 0, 0)),
            pl.BlockSpec((L, C), lambda n: (0, 0)),
            pl.BlockSpec((L, C), lambda n: (0, 0)),
            pl.BlockSpec((F, n_classes), lambda n: (0, 0)),
            pl.BlockSpec((1, n_classes), lambda n: (0, 0)),
        ],
        out_specs=pl.BlockSpec((1, 1, n_classes), lambda n: (n, 0, 0)),
        compiler_params=pltpu.CompilerParams(dimension_semantics=("parallel",)),
    )(x_cols, kp["w1"], kp["w234"], kp["scale"], kp["shift"], kp["wcls"], kp["bcls"])
    return out[:, 0, :]


def _im2col_3x3_same(x_nhwc, k_pad):
    """(N, H, W, Cin) -> (N, H*W, k_pad) bf16 patches for a 3x3 'same' conv."""
    N, H, W, Cin = x_nhwc.shape
    xp = jnp.pad(x_nhwc, ((0, 0), (1, 1), (1, 1), (0, 0)))
    cols = [xp[:, dh:dh + H, dw:dw + W, :] for dh in range(3) for dw in range(3)]
    cols = jnp.concatenate(cols, axis=-1).reshape(N, H * W, 9 * Cin)
    if k_pad > 9 * Cin:
        cols = jnp.pad(cols, ((0, 0), (0, 0), (0, k_pad - 9 * Cin)))
    return cols.astype(jnp.bfloat16)


def kcnn_forward(x_nchw, kp):
    """Matches Kcnn.forward (spp=False): features -> flatten -> cls."""
    N, Cin, H, W = x_nchw.shape
    x_nhwc = jnp.transpose(x_nchw, (0, 2, 3, 1))          # tiny, once per forward
    x_cols = _im2col_3x3_same(x_nhwc, kp["w1"].shape[0])  # layer-1 im2col in wrapper
    return _kcnn_fused_call(x_cols, kp, H=H, W=W)


# ----------------------------------------------------------------------------
# One-time weight repacking (hoisted out of the forward path)
# ----------------------------------------------------------------------------
def prepare_params(params, image_size):
    conv = params["conv"]
    L = len(conv)
    C = conv[-1]["w_oihw"].shape[0]

    def to_mat(w_oihw):  # (Cout, Cin, 3, 3) -> (9*Cin, Cout), row order = (dh, dw, cin)
        cout, cin, kh, kw = w_oihw.shape
        return jnp.transpose(w_oihw, (2, 3, 1, 0)).reshape(kh * kw * cin, cout)

    w1 = to_mat(conv[0]["w_oihw"])                        # (27, C) for Cin=3
    k1 = w1.shape[0]
    k1p = 8 * ((k1 + 7) // 8)                             # pad K to a multiple of 8 -> 32
    w1 = jnp.pad(w1, ((0, k1p - k1), (0, 0))).astype(jnp.bfloat16)
    if L > 1:
        w234 = jnp.stack([to_mat(p["w_oihw"]) for p in conv[1:]], axis=0)
    else:
        w234 = jnp.zeros((1, 9 * C, C), jnp.float32)      # dummy, never read
    w234 = w234.astype(jnp.bfloat16)
    scale = jnp.stack([p["scale"] for p in conv], axis=0)  # (L, C) f32
    shift = jnp.stack([p["shift"] for p in conv], axis=0)  # (L, C) f32

    hf = image_size // (2 ** L)
    ncls = params["cls_w"].shape[1]
    # cls_w rows are in torch NCHW-flatten order (c, h, w); permute to NHWC order (h, w, c).
    wcls = (params["cls_w"].reshape(C, hf, hf, ncls)
            .transpose(1, 2, 0, 3).reshape(C * hf * hf, ncls)).astype(jnp.bfloat16)
    bcls = params["cls_b"][None, :].astype(jnp.float32)
    return {"w1": w1, "w234": w234, "scale": scale, "shift": shift,
            "wcls": wcls, "bcls": bcls}


# ----------------------------------------------------------------------------
# Deterministic parameter init (shapes from Kcnn.__init__, spp=False)
# ----------------------------------------------------------------------------
def init_params(key, image_size, filter_size, nb_feature_layers, n_classes, bn_eps):
    params = {"conv": []}
    cin = 3
    for _ in range(nb_feature_layers):
        key, kw, kb, kg, kbe, km, kv = jax.random.split(key, 7)
        fan_in = cin * 9
        w = jax.random.normal(kw, (filter_size, cin, 3, 3), jnp.float32) / jnp.sqrt(fan_in)
        b = 0.1 * jax.random.normal(kb, (filter_size,), jnp.float32)
        gamma = 1.0 + 0.1 * jax.random.normal(kg, (filter_size,), jnp.float32)
        beta = 0.1 * jax.random.normal(kbe, (filter_size,), jnp.float32)
        r_mean = 0.1 * jax.random.normal(km, (filter_size,), jnp.float32)
        r_var = 1.0 + 0.5 * jax.random.uniform(kv, (filter_size,), jnp.float32)
        scale = gamma / jnp.sqrt(r_var + bn_eps)
        shift = (b - r_mean) * scale + beta
        params["conv"].append({"w_oihw": w, "scale": scale, "shift": shift})
        cin = filter_size
    clr_in = image_size // 2 ** nb_feature_layers
    feat = filter_size * clr_in * clr_in
    key, kw, kb = jax.random.split(key, 3)
    params["cls_w"] = jax.random.normal(kw, (feat, n_classes), jnp.float32) / jnp.sqrt(feat)
    params["cls_b"] = 0.1 * jax.random.normal(kb, (n_classes,), jnp.float32)
    return params


# ----------------------------------------------------------------------------
# Pure-JAX reference (same bf16-operand / f32-accumulate matmul semantics)
# ----------------------------------------------------------------------------
def reference_forward(x_nchw, params):
    x = x_nchw
    for p in params["conv"]:
        x = lax.conv_general_dilated(
            x.astype(jnp.bfloat16), p["w_oihw"].astype(jnp.bfloat16),
            window_strides=(1, 1), padding=((1, 1), (1, 1)),
            dimension_numbers=("NCHW", "OIHW", "NCHW"),
            preferred_element_type=jnp.float32)
        x = x * p["scale"][None, :, None, None] + p["shift"][None, :, None, None]
        x = jnp.maximum(x, 0.0)
        x = lax.reduce_window(x, -jnp.inf, lax.max,
                              (1, 1, 2, 2), (1, 1, 2, 2), "VALID")
    flat = x.reshape(x.shape[0], -1)                      # torch NCHW flatten
    return (jnp.dot(flat.astype(jnp.bfloat16), params["cls_w"].astype(jnp.bfloat16),
                    preferred_element_type=jnp.float32)
            + params["cls_b"][None, :])


if __name__ == "__main__":
    image_size, filter_size, nb_layers, n_classes, bn_eps = 16, 32, 4, 10, 1e-5
    key = jax.random.PRNGKey(0)
    key, kx = jax.random.split(key)
    x = jax.random.normal(kx, (2, 3, image_size, image_size), jnp.float32)  # NCHW, like PyTorch
    params = init_params(key, image_size, filter_size, nb_layers, n_classes, bn_eps)
    kparams = prepare_params(params, image_size)   # one-time repack, hoisted out of forward

    out = jax.block_until_ready(jax.jit(kcnn_forward)(x, kparams))
    assert out.shape == (2, n_classes), out.shape

    ref = reference_forward(x, params)
    if not jnp.allclose(out, ref, rtol=2e-3, atol=2e-3):
        raise AssertionError(f"mismatch: max abs err = {jnp.max(jnp.abs(out - ref))}")
    print("KERNEL_OK")
</pallas_src>

<mosaic_0001>
module attributes {stable_mosaic.version = 11 : i64} {
  func.func @_kcnn_fused_kernel(%arg0: i32, %arg1: memref<1x256x32xbf16, #tpu.memory_space<vmem>>, %arg2: memref<32x32xbf16, #tpu.memory_space<vmem>>, %arg3: memref<3x288x32xbf16, #tpu.memory_space<vmem>>, %arg4: memref<4x32xf32, #tpu.memory_space<vmem>>, %arg5: memref<4x32xf32, #tpu.memory_space<vmem>>, %arg6: memref<32x10xbf16, #tpu.memory_space<vmem>>, %arg7: memref<1x10xf32, #tpu.memory_space<vmem>>, %arg8: memref<1x1x10xf32, #tpu.memory_space<vmem>>) attributes {dimension_semantics = [#tpu.dimension_semantics<parallel>], iteration_bounds = array<i64: 2>, scalar_prefetch = 0 : i64, scratch_operands = 0 : i64, tpu.core_type = #tpu.core_type<tc>, window_params = [{transform_indices = @transform_0, window_bounds = array<i64: 1, 256, 32>}, {pipeline_mode = #tpu.pipeline_mode<synchronous>, transform_indices = @transform_1, window_bounds = array<i64: 32, 32>}, {pipeline_mode = #tpu.pipeline_mode<synchronous>, transform_indices = @transform_2, window_bounds = array<i64: 3, 288, 32>}, {pipeline_mode = #tpu.pipeline_mode<synchronous>, transform_indices = @transform_3, window_bounds = array<i64: 4, 32>}, {pipeline_mode = #tpu.pipeline_mode<synchronous>, transform_indices = @transform_4, window_bounds = array<i64: 4, 32>}, {pipeline_mode = #tpu.pipeline_mode<synchronous>, transform_indices = @transform_5, window_bounds = array<i64: 32, 10>}, {pipeline_mode = #tpu.pipeline_mode<synchronous>, transform_indices = @transform_6, window_bounds = array<i64: 1, 10>}, {transform_indices = @transform_7, window_bounds = array<i64: 1, 1, 10>}]} {
    %c0 = arith.constant 0 : index
    %c0_0 = arith.constant 0 : index
    %c0_1 = arith.constant 0 : index
    %0 = vector.load %arg1[%c0, %c0_0, %c0_1] : memref<1x256x32xbf16, #tpu.memory_space<vmem>>, vector<1x256x32xbf16>
    %1 = vector.shape_cast %0 : vector<1x256x32xbf16> to vector<256x32xbf16>
    %c0_2 = arith.constant 0 : index
    %c0_3 = arith.constant 0 : index
    %2 = vector.load %arg2[%c0_2, %c0_3] : memref<32x32xbf16, #tpu.memory_space<vmem>>, vector<32x32xbf16>
    %cst = arith.constant dense<0.000000e+00> : vector<256x32xf32>
    %3 = tpu.matmul %1, %2, %cst {dimension_numbers = #tpu.dot_dimension_numbers<[1], [0], [0], [1], [0, 0, 1, 1], [], []>} : vector<256x32xbf16>, vector<32x32xbf16>, vector<256x32xf32> -> vector<256x32xf32>
    %c0_4 = arith.constant 0 : index
    %c0_5 = arith.constant 0 : index
    %4 = vector.load %arg4[%c0_4, %c0_5] : memref<4x32xf32, #tpu.memory_space<vmem>>, vector<1x32xf32>
    %c0_6 = arith.constant 0 : index
    %c0_7 = arith.constant 0 : index
    %5 = vector.load %arg5[%c0_6, %c0_7] : memref<4x32xf32, #tpu.memory_space<vmem>>, vector<1x32xf32>
    %6 = vector.broadcast %4 : vector<1x32xf32> to vector<256x32xf32>
    %7 = arith.mulf %3, %6 : vector<256x32xf32>
    %8 = vector.broadcast %5 : vector<1x32xf32> to vector<256x32xf32>
    %9 = arith.addf %7, %8 : vector<256x32xf32>
    %cst_8 = arith.constant 0.000000e+00 : f32
    %10 = vector.broadcast %cst_8 : f32 to vector<256x32xf32>
    %11 = arith.maximumf %9, %10 : vector<256x32xf32>
    %12 = vector.shape_cast %11 : vector<256x32xf32> to vector<16x16x32xf32>
    %13 = vector.shape_cast %12 : vector<16x16x32xf32> to vector<8x2x16x32xf32>
    %14 = vector.extract_strided_slice %13 {offsets = [0, 0, 0, 0], sizes = [8, 1, 16, 32], strides = [1, 1, 1, 1]} : vector<8x2x16x32xf32> to vector<8x1x16x32xf32>
    %15 = vector.shape_cast %14 : vector<8x1x16x32xf32> to vector<8x16x32xf32>
    %16 = vector.extract_strided_slice %13 {offsets = [0, 1, 0, 0], sizes = [8, 1, 16, 32], strides = [1, 1, 1, 1]} : vector<8x2x16x32xf32> to vector<8x1x16x32xf32>
    %17 = vector.shape_cast %16 : vector<8x1x16x32xf32> to vector<8x16x32xf32>
    %18 = arith.maximumf %15, %17 : vector<8x16x32xf32>
    %19 = vector.shape_cast %18 : vector<8x16x32xf32> to vector<8x8x2x32xf32>
    %20 = vector.extract_strided_slice %19 {offsets = [0, 0, 0, 0], sizes = [8, 8, 1, 32], strides = [1, 1, 1, 1]} : vector<8x8x2x32xf32> to vector<8x8x1x32xf32>
    %21 = vector.shape_cast %20 : vector<8x8x1x32xf32> to vector<8x8x32xf32>
    %22 = vector.extract_strided_slice %19 {offsets = [0, 0, 1, 0], sizes = [8, 8, 1, 32], strides = [1, 1, 1, 1]} : vector<8x8x2x32xf32> to vector<8x8x1x32xf32>
    %23 = vector.shape_cast %22 : vector<8x8x1x32xf32> to vector<8x8x32xf32>
    %24 = arith.maximumf %21, %23 : vector<8x8x32xf32>
    %cst_9 = arith.constant 0.000000e+00 : f32
    %25 = vector.broadcast %cst_9 : f32 to vector<1x8x32xf32>
    %cst_10 = arith.constant 0.000000e+00 : f32
    %26 = vector.broadcast %cst_10 : f32 to vector<10x1x32xf32>
    %27 = tpu.concatenate %25, %24, %25 in 0 : vector<1x8x32xf32>, vector<8x8x32xf32>, vector<1x8x32xf32> -> vector<10x8x32xf32>
    %28 = tpu.concatenate %26, %27, %26 in 1 : vector<10x1x32xf32>, vector<10x8x32xf32>, vector<10x1x32xf32> -> vector<10x10x32xf32>
    %29 = vector.extract_strided_slice %28 {offsets = [0, 0, 0], sizes = [8, 8, 32], strides = [1, 1, 1]} : vector<10x10x32xf32> to vector<8x8x32xf32>
    %30 = vector.shape_cast %29 : vector<8x8x32xf32> to vector<64x32xf32>
    %31 = vector.extract_strided_slice %28 {offsets = [0, 1, 0], sizes = [8, 8, 32], strides = [1, 1, 1]} : vector<10x10x32xf32> to vector<8x8x32xf32>
    %32 = vector.shape_cast %31 : vector<8x8x32xf32> to vector<64x32xf32>
    %33 = vector.extract_strided_slice %28 {offsets = [0, 2, 0], sizes = [8, 8, 32], strides = [1, 1, 1]} : vector<10x10x32xf32> to vector<8x8x32xf32>
    %34 = vector.shape_cast %33 : vector<8x8x32xf32> to vector<64x32xf32>
    %35 = vector.extract_strided_slice %28 {offsets = [1, 0, 0], sizes = [8, 8, 32], strides = [1, 1, 1]} : vector<10x10x32xf32> to vector<8x8x32xf32>
    %36 = vector.shape_cast %35 : vector<8x8x32xf32> to vector<64x32xf32>
    %37 = vector.extract_strided_slice %28 {offsets = [1, 1, 0], sizes = [8, 8, 32], strides = [1, 1, 1]} : vector<10x10x32xf32> to vector<8x8x32xf32>
    %38 = vector.shape_cast %37 : vector<8x8x32xf32> to vector<64x32xf32>
    %39 = vector.extract_strided_slice %28 {offsets = [1, 2, 0], sizes = [8, 8, 32], strides = [1, 1, 1]} : vector<10x10x32xf32> to vector<8x8x32xf32>
    %40 = vector.shape_cast %39 : vector<8x8x32xf32> to vector<64x32xf32>
    %41 = vector.extract_strided_slice %28 {offsets = [2, 0, 0], sizes = [8, 8, 32], strides = [1, 1, 1]} : vector<10x10x32xf32> to vector<8x8x32xf32>
    %42 = vector.shape_cast %41 : vector<8x8x32xf32> to vector<64x32xf32>
    %43 = vector.extract_strided_slice %28 {offsets = [2, 1, 0], sizes = [8, 8, 32], strides = [1, 1, 1]} : vector<10x10x32xf32> to vector<8x8x32xf32>
    %44 = vector.shape_cast %43 : vector<8x8x32xf32> to vector<64x32xf32>
    %45 = vector.extract_strided_slice %28 {offsets = [2, 2, 0], sizes = [8, 8, 32], strides = [1, 1, 1]} : vector<10x10x32xf32> to vector<8x8x32xf32>
    %46 = vector.shape_cast %45 : vector<8x8x32xf32> to vector<64x32xf32>
    %47 = tpu.concatenate %30, %32, %34, %36, %38, %40, %42, %44, %46 in 1 : vector<64x32xf32>, vector<64x32xf32>, vector<64x32xf32>, vector<64x32xf32>, vector<64x32xf32>, vector<64x32xf32>, vector<64x32xf32>, vector<64x32xf32>, vector<64x32xf32> -> vector<64x288xf32>
    %48 = arith.truncf %47 : vector<64x288xf32> to vector<64x288xbf16>
    %c0_11 = arith.constant 0 : index
    %c0_12 = arith.constant 0 : index
    %c0_13 = arith.constant 0 : index
    %49 = vector.load %arg3[%c0_11, %c0_12, %c0_13] : memref<3x288x32xbf16, #tpu.memory_space<vmem>>, vector<1x288x32xbf16>
    %50 = vector.shape_cast %49 : vector<1x288x32xbf16> to vector<288x32xbf16>
    %cst_14 = arith.constant dense<0.000000e+00> : vector<64x32xf32>
    %51 = tpu.matmul %48, %50, %cst_14 {dimension_numbers = #tpu.dot_dimension_numbers<[1], [0], [0], [1], [0, 0, 1, 1], [], []>} : vector<64x288xbf16>, vector<288x32xbf16>, vector<64x32xf32> -> vector<64x32xf32>
    %c1 = arith.constant 1 : index
    %c0_15 = arith.constant 0 : index
    %52 = vector.load %arg4[%c1, %c0_15] : memref<4x32xf32, #tpu.memory_space<vmem>>, vector<1x32xf32>
    %c1_16 = arith.constant 1 : index
    %c0_17 = arith.constant 0 : index
    %53 = vector.load %arg5[%c1_16, %c0_17] : memref<4x32xf32, #tpu.memory_space<vmem>>, vector<1x32xf32>
    %54 = vector.broadcast %52 : vector<1x32xf32> to vector<64x32xf32>
    %55 = arith.mulf %51, %54 : vector<64x32xf32>
    %56 = vector.broadcast %53 : vector<1x32xf32> to vector<64x32xf32>
    %57 = arith.addf %55, %56 : vector<64x32xf32>
    %cst_18 = arith.constant 0.000000e+00 : f32
    %58 = vector.broadcast %cst_18 : f32 to vector<64x32xf32>
    %59 = arith.maximumf %57, %58 : vector<64x32xf32>
    %60 = vector.shape_cast %59 : vector<64x32xf32> to vector<8x8x32xf32>
    %61 = vector.shape_cast %60 : vector<8x8x32xf32> to vector<4x2x8x32xf32>
    %62 = vector.extract_strided_slice %61 {offsets = [0, 0, 0, 0], sizes = [4, 1, 8, 32], strides = [1, 1, 1, 1]} : vector<4x2x8x32xf32> to vector<4x1x8x32xf32>
    %63 = vector.shape_cast %62 : vector<4x1x8x32xf32> to vector<4x8x32xf32>
    %64 = vector.extract_strided_slice %61 {offsets = [0, 1, 0, 0], sizes = [4, 1, 8, 32], strides = [1, 1, 1, 1]} : vector<4x2x8x32xf32> to vector<4x1x8x32xf32>
    %65 = vector.shape_cast %64 : vector<4x1x8x32xf32> to vector<4x8x32xf32>
    %66 = arith.maximumf %63, %65 : vector<4x8x32xf32>
    %67 = vector.shape_cast %66 : vector<4x8x32xf32> to vector<4x4x2x32xf32>
    %68 = vector.extract_strided_slice %67 {offsets = [0, 0, 0, 0], sizes = [4, 4, 1, 32], strides = [1, 1, 1, 1]} : vector<4x4x2x32xf32> to vector<4x4x1x32xf32>
    %69 = vector.shape_cast %68 : vector<4x4x1x32xf32> to vector<4x4x32xf32>
    %70 = vector.extract_strided_slice %67 {offsets = [0, 0, 1, 0], sizes = [4, 4, 1, 32], strides = [1, 1, 1, 1]} : vector<4x4x2x32xf32> to vector<4x4x1x32xf32>
    %71 = vector.shape_cast %70 : vector<4x4x1x32xf32> to vector<4x4x32xf32>
    %72 = arith.maximumf %69, %71 : vector<4x4x32xf32>
    %cst_19 = arith.constant 0.000000e+00 : f32
    %73 = vector.broadcast %cst_19 : f32 to vector<1x4x32xf32>
    %cst_20 = arith.constant 0.000000e+00 : f32
    %74 = vector.broadcast %cst_20 : f32 to vector<6x1x32xf32>
    %75 = tpu.concatenate %73, %72, %73 in 0 : vector<1x4x32xf32>, vector<4x4x32xf32>, vector<1x4x32xf32> -> vector<6x4x32xf32>
    %76 = tpu.concatenate %74, %75, %74 in 1 : vector<6x1x32xf32>, vector<6x4x32xf32>, vector<6x1x32xf32> -> vector<6x6x32xf32>
    %77 = vector.extract_strided_slice %76 {offsets = [0, 0, 0], sizes = [4, 4, 32], strides = [1, 1, 1]} : vector<6x6x32xf32> to vector<4x4x32xf32>
    %78 = vector.shape_cast %77 : vector<4x4x32xf32> to vector<16x32xf32>
    %79 = vector.extract_strided_slice %76 {offsets = [0, 1, 0], sizes = [4, 4, 32], strides = [1, 1, 1]} : vector<6x6x32xf32> to vector<4x4x32xf32>
    %80 = vector.shape_cast %79 : vector<4x4x32xf32> to vector<16x32xf32>
    %81 = vector.extract_strided_slice %76 {offsets = [0, 2, 0], sizes = [4, 4, 32], strides = [1, 1, 1]} : vector<6x6x32xf32> to vector<4x4x32xf32>
    %82 = vector.shape_cast %81 : vector<4x4x32xf32> to vector<16x32xf32>
    %83 = vector.extract_strided_slice %76 {offsets = [1, 0, 0], sizes = [4, 4, 32], strides = [1, 1, 1]} : vector<6x6x32xf32> to vector<4x4x32xf32>
    %84 = vector.shape_cast %83 : vector<4x4x32xf32> to vector<16x32xf32>
    %85 = vector.extract_strided_slice %76 {offsets = [1, 1, 0], sizes = [4, 4, 32], strides = [1, 1, 1]} : vector<6x6x32xf32> to vector<4x4x32xf32>
    %86 = vector.shape_cast %85 : vector<4x4x32xf32> to vector<16x32xf32>
    %87 = vector.extract_strided_slice %76 {offsets = [1, 2, 0], sizes = [4, 4, 32], strides = [1, 1, 1]} : vector<6x6x32xf32> to vector<4x4x32xf32>
    %88 = vector.shape_cast %87 : vector<4x4x32xf32> to vector<16x32xf32>
    %89 = vector.extract_strided_slice %76 {offsets = [2, 0, 0], sizes = [4, 4, 32], strides = [1, 1, 1]} : vector<6x6x32xf32> to vector<4x4x32xf32>
    %90 = vector.shape_cast %89 : vector<4x4x32xf32> to vector<16x32xf32>
    %91 = vector.extract_strided_slice %76 {offsets = [2, 1, 0], sizes = [4, 4, 32], strides = [1, 1, 1]} : vector<6x6x32xf32> to vector<4x4x32xf32>
    %92 = vector.shape_cast %91 : vector<4x4x32xf32> to vector<16x32xf32>
    %93 = vector.extract_strided_slice %76 {offsets = [2, 2, 0], sizes = [4, 4, 32], strides = [1, 1, 1]} : vector<6x6x32xf32> to vector<4x4x32xf32>
    %94 = vector.shape_cast %93 : vector<4x4x32xf32> to vector<16x32xf32>
    %95 = tpu.concatenate %78, %80, %82, %84, %86, %88, %90, %92, %94 in 1 : vector<16x32xf32>, vector<16x32xf32>, vector<16x32xf32>, vector<16x32xf32>, vector<16x32xf32>, vector<16x32xf32>, vector<16x32xf32>, vector<16x32xf32>, vector<16x32xf32> -> vector<16x288xf32>
    %96 = arith.truncf %95 : vector<16x288xf32> to vector<16x288xbf16>
    %c1_21 = arith.constant 1 : index
    %c0_22 = arith.constant 0 : index
    %c0_23 = arith.constant 0 : index
    %97 = vector.load %arg3[%c1_21, %c0_22, %c0_23] : memref<3x288x32xbf16, #tpu.memory_space<vmem>>, vector<1x288x32xbf16>
    %98 = vector.shape_cast %97 : vector<1x288x32xbf16> to vector<288x32xbf16>
    %cst_24 = arith.constant dense<0.000000e+00> : vector<16x32xf32>
    %99 = tpu.matmul %96, %98, %cst_24 {dimension_numbers = #tpu.dot_dimension_numbers<[1], [0], [0], [1], [0, 0, 1, 1], [], []>} : vector<16x288xbf16>, vector<288x32xbf16>, vector<16x32xf32> -> vector<16x32xf32>
    %c2 = arith.constant 2 : index
    %c0_25 = arith.constant 0 : index
    %100 = vector.load %arg4[%c2, %c0_25] : memref<4x32xf32, #tpu.memory_space<vmem>>, vector<1x32xf32>
    %c2_26 = arith.constant 2 : index
    %c0_27 = arith.constant 0 : index
    %101 = vector.load %arg5[%c2_26, %c0_27] : memref<4x32xf32, #tpu.memory_space<vmem>>, vector<1x32xf32>
    %102 = vector.broadcast %100 : vector<1x32xf32> to vector<16x32xf32>
    %103 = arith.mulf %99, %102 : vector<16x32xf32>
    %104 = vector.broadcast %101 : vector<1x32xf32> to vector<16x32xf32>
    %105 = arith.addf %103, %104 : vector<16x32xf32>
    %cst_28 = arith.constant 0.000000e+00 : f32
    %106 = vector.broadcast %cst_28 : f32 to vector<16x32xf32>
    %107 = arith.maximumf %105, %106 : vector<16x32xf32>
    %108 = vector.shape_cast %107 : vector<16x32xf32> to vector<4x4x32xf32>
    %109 = vector.shape_cast %108 : vector<4x4x32xf32> to vector<2x2x4x32xf32>
    %110 = vector.extract_strided_slice %109 {offsets = [0, 0, 0, 0], sizes = [2, 1, 4, 32], strides = [1, 1, 1, 1]} : vector<2x2x4x32xf32> to vector<2x1x4x32xf32>
    %111 = vector.shape_cast %110 : vector<2x1x4x32xf32> to vector<2x4x32xf32>
    %112 = vector.extract_strided_slice %109 {offsets = [0, 1, 0, 0], sizes = [2, 1, 4, 32], strides = [1, 1, 1, 1]} : vector<2x2x4x32xf32> to vector<2x1x4x32xf32>
    %113 = vector.shape_cast %112 : vector<2x1x4x32xf32> to vector<2x4x32xf32>
    %114 = arith.maximumf %111, %113 : vector<2x4x32xf32>
    %115 = vector.shape_cast %114 : vector<2x4x32xf32> to vector<2x2x2x32xf32>
    %116 = vector.extract_strided_slice %115 {offsets = [0, 0, 0, 0], sizes = [2, 2, 1, 32], strides = [1, 1, 1, 1]} : vector<2x2x2x32xf32> to vector<2x2x1x32xf32>
    %117 = vector.shape_cast %116 : vector<2x2x1x32xf32> to vector<2x2x32xf32>
    %118 = vector.extract_strided_slice %115 {offsets = [0, 0, 1, 0], sizes = [2, 2, 1, 32], strides = [1, 1, 1, 1]} : vector<2x2x2x32xf32> to vector<2x2x1x32xf32>
    %119 = vector.shape_cast %118 : vector<2x2x1x32xf32> to vector<2x2x32xf32>
    %120 = arith.maximumf %117, %119 : vector<2x2x32xf32>
    %cst_29 = arith.constant 0.000000e+00 : f32
    %121 = vector.broadcast %cst_29 : f32 to vector<1x2x32xf32>
    %cst_30 = arith.constant 0.000000e+00 : f32
    %122 = vector.broadcast %cst_30 : f32 to vector<4x1x32xf32>
    %123 = tpu.concatenate %121, %120, %121 in 0 : vector<1x2x32xf32>, vector<2x2x32xf32>, vector<1x2x32xf32> -> vector<4x2x32xf32>
    %124 = tpu.concatenate %122, %123, %122 in 1 : vector<4x1x32xf32>, vector<4x2x32xf32>, vector<4x1x32xf32> -> vector<4x4x32xf32>
    %125 = vector.extract_strided_slice %124 {offsets = [0, 0, 0], sizes = [2, 2, 32], strides = [1, 1, 1]} : vector<4x4x32xf32> to vector<2x2x32xf32>
    %126 = vector.shape_cast %125 : vector<2x2x32xf32> to vector<4x32xf32>
    %127 = vector.extract_strided_slice %124 {offsets = [0, 1, 0], sizes = [2, 2, 32], strides = [1, 1, 1]} : vector<4x4x32xf32> to vector<2x2x32xf32>
    %128 = vector.shape_cast %127 : vector<2x2x32xf32> to vector<4x32xf32>
    %129 = vector.extract_strided_slice %124 {offsets = [0, 2, 0], sizes = [2, 2, 32], strides = [1, 1, 1]} : vector<4x4x32xf32> to vector<2x2x32xf32>
    %130 = vector.shape_cast %129 : vector<2x2x32xf32> to vector<4x32xf32>
    %131 = vector.extract_strided_slice %124 {offsets = [1, 0, 0], sizes = [2, 2, 32], strides = [1, 1, 1]} : vector<4x4x32xf32> to vector<2x2x32xf32>
    %132 = vector.shape_cast %131 : vector<2x2x32xf32> to vector<4x32xf32>
    %133 = vector.extract_strided_slice %124 {offsets = [1, 1, 0], sizes = [2, 2, 32], strides = [1, 1, 1]} : vector<4x4x32xf32> to vector<2x2x32xf32>
    %134 = vector.shape_cast %133 : vector<2x2x32xf32> to vector<4x32xf32>
    %135 = vector.extract_strided_slice %124 {offsets = [1, 2, 0], sizes = [2, 2, 32], strides = [1, 1, 1]} : vector<4x4x32xf32> to vector<2x2x32xf32>
    %136 = vector.shape_cast %135 : vector<2x2x32xf32> to vector<4x32xf32>
    %137 = vector.extract_strided_slice %124 {offsets = [2, 0, 0], sizes = [2, 2, 32], strides = [1, 1, 1]} : vector<4x4x32xf32> to vector<2x2x32xf32>
    %138 = vector.shape_cast %137 : vector<2x2x32xf32> to vector<4x32xf32>
    %139 = vector.extract_strided_slice %124 {offsets = [2, 1, 0], sizes = [2, 2, 32], strides = [1, 1, 1]} : vector<4x4x32xf32> to vector<2x2x32xf32>
    %140 = vector.shape_cast %139 : vector<2x2x32xf32> to vector<4x32xf32>
    %141 = vector.extract_strided_slice %124 {offsets = [2, 2, 0], sizes = [2, 2, 32], strides = [1, 1, 1]} : vector<4x4x32xf32> to vector<2x2x32xf32>
    %142 = vector.shape_cast %141 : vector<2x2x32xf32> to vector<4x32xf32>
    %143 = tpu.concatenate %126, %128, %130, %132, %134, %136, %138, %140, %142 in 1 : vector<4x32xf32>, vector<4x32xf32>, vector<4x32xf32>, vector<4x32xf32>, vector<4x32xf32>, vector<4x32xf32>, vector<4x32xf32>, vector<4x32xf32>, vector<4x32xf32> -> vector<4x288xf32>
    %144 = arith.truncf %143 : vector<4x288xf32> to vector<4x288xbf16>
    %c2_31 = arith.constant 2 : index
    %c0_32 = arith.constant 0 : index
    %c0_33 = arith.constant 0 : index
    %145 = vector.load %arg3[%c2_31, %c0_32, %c0_33] : memref<3x288x32xbf16, #tpu.memory_space<vmem>>, vector<1x288x32xbf16>
    %146 = vector.shape_cast %145 : vector<1x288x32xbf16> to vector<288x32xbf16>
    %cst_34 = arith.constant dense<0.000000e+00> : vector<4x32xf32>
    %147 = tpu.matmul %144, %146, %cst_34 {dimension_numbers = #tpu.dot_dimension_numbers<[1], [0], [0], [1], [0, 0, 1, 1], [], []>} : vector<4x288xbf16>, vector<288x32xbf16>, vector<4x32xf32> -> vector<4x32xf32>
    %c3 = arith.constant 3 : index
    %c0_35 = arith.constant 0 : index
    %148 = vector.load %arg4[%c3, %c0_35] : memref<4x32xf32, #tpu.memory_space<vmem>>, vector<1x32xf32>
    %c3_36 = arith.constant 3 : index
    %c0_37 = arith.constant 0 : index
    %149 = vector.load %arg5[%c3_36, %c0_37] : memref<4x32xf32, #tpu.memory_space<vmem>>, vector<1x32xf32>
    %150 = vector.broadcast %148 : vector<1x32xf32> to vector<4x32xf32>
    %151 = arith.mulf %147, %150 : vector<4x32xf32>
    %152 = vector.broadcast %149 : vector<1x32xf32> to vector<4x32xf32>
    %153 = arith.addf %151, %152 : vector<4x32xf32>
    %cst_38 = arith.constant 0.000000e+00 : f32
    %154 = vector.broadcast %cst_38 : f32 to vector<4x32xf32>
    %155 = arith.maximumf %153, %154 : vector<4x32xf32>
    %156 = vector.shape_cast %155 : vector<4x32xf32> to vector<2x2x32xf32>
    %157 = vector.shape_cast %156 : vector<2x2x32xf32> to vector<1x2x2x32xf32>
    %158 = vector.extract_strided_slice %157 {offsets = [0, 0, 0, 0], sizes = [1, 1, 2, 32], strides = [1, 1, 1, 1]} : vector<1x2x2x32xf32> to vector<1x1x2x32xf32>
    %159 = vector.shape_cast %158 : vector<1x1x2x32xf32> to vector<1x2x32xf32>
    %160 = vector.extract_strided_slice %157 {offsets = [0, 1, 0, 0], sizes = [1, 1, 2, 32], strides = [1, 1, 1, 1]} : vector<1x2x2x32xf32> to vector<1x1x2x32xf32>
    %161 = vector.shape_cast %160 : vector<1x1x2x32xf32> to vector<1x2x32xf32>
    %162 = arith.maximumf %159, %161 : vector<1x2x32xf32>
    %163 = vector.shape_cast %162 : vector<1x2x32xf32> to vector<1x1x2x32xf32>
    %164 = vector.extract_strided_slice %163 {offsets = [0, 0, 0, 0], sizes = [1, 1, 1, 32], strides = [1, 1, 1, 1]} : vector<1x1x2x32xf32> to vector<1x1x1x32xf32>
    %165 = vector.shape_cast %164 : vector<1x1x1x32xf32> to vector<1x1x32xf32>
    %166 = vector.extract_strided_slice %163 {offsets = [0, 0, 1, 0], sizes = [1, 1, 1, 32], strides = [1, 1, 1, 1]} : vector<1x1x2x32xf32> to vector<1x1x1x32xf32>
    %167 = vector.shape_cast %166 : vector<1x1x1x32xf32> to vector<1x1x32xf32>
    %168 = arith.maximumf %165, %167 : vector<1x1x32xf32>
    %169 = vector.shape_cast %168 : vector<1x1x32xf32> to vector<1x32xf32>
    %170 = arith.truncf %169 : vector<1x32xf32> to vector<1x32xbf16>
    %c0_39 = arith.constant 0 : index
    %c0_40 = arith.constant 0 : index
    %171 = vector.load %arg6[%c0_39, %c0_40] : memref<32x10xbf16, #tpu.memory_space<vmem>>, vector<32x10xbf16>
    %cst_41 = arith.constant dense<0.000000e+00> : vector<1x10xf32>
    %172 = tpu.matmul %170, %171, %cst_41 {dimension_numbers = #tpu.dot_dimension_numbers<[1], [0], [0], [1], [0, 0, 1, 1], [], []>} : vector<1x32xbf16>, vector<32x10xbf16>, vector<1x10xf32> -> vector<1x10xf32>
    %c0_42 = arith.constant 0 : index
    %c0_43 = arith.constant 0 : index
    %173 = vector.load %arg7[%c0_42, %c0_43] : memref<1x10xf32, #tpu.memory_space<vmem>>, vector<1x10xf32>
    %174 = arith.addf %172, %173 : vector<1x10xf32>
    %175 = vector.shape_cast %174 : vector<1x10xf32> to vector<1x1x10xf32>
    %c0_44 = arith.constant 0 : index
    %c0_45 = arith.constant 0 : index
    %c0_46 = arith.constant 0 : index
    %176 = vector.load %arg8[%c0_44, %c0_45, %c0_46] : memref<1x1x10xf32, #tpu.memory_space<vmem>>, vector<1x1x10xf32>
    tpu.vector_store %arg8[%c0_44, %c0_45, %c0_46], %175 {strides = array<i32>} : memref<1x1x10xf32, #tpu.memory_space<vmem>>, vector<1x1x10xf32>,
    return
  }
  func.func @transform_0(%arg0: i32) -> (i32, i32, i32) {
    %c0_i32 = arith.constant 0 : i32
    %c0_i32_0 = arith.constant 0 : i32
    %c0_i32_1 = arith.constant 0 : i32
    return %arg0, %c0_i32, %c0_i32_0 : i32, i32, i32
  }
  func.func @transform_1(%arg0: i32) -> (i32, i32) {
    %c0_i32 = arith.constant 0 : i32
    %c0_i32_0 = arith.constant 0 : i32
    %c0_i32_1 = arith.constant 0 : i32
    return %c0_i32, %c0_i32_0 : i32, i32
  }
  func.func @transform_2(%arg0: i32) -> (i32, i32, i32) {
    %c0_i32 = arith.constant 0 : i32
    %c0_i32_0 = arith.constant 0 : i32
    %c0_i32_1 = arith.constant 0 : i32
    %c0_i32_2 = arith.constant 0 : i32
    return %c0_i32, %c0_i32_0, %c0_i32_1 : i32, i32, i32
  }
  func.func @transform_3(%arg0: i32) -> (i32, i32) {
    %c0_i32 = arith.constant 0 : i32
    %c0_i32_0 = arith.constant 0 : i32
    %c0_i32_1 = arith.constant 0 : i32
    return %c0_i32, %c0_i32_0 : i32, i32
  }
  func.func @transform_4(%arg0: i32) -> (i32, i32) {
    %c0_i32 = arith.constant 0 : i32
    %c0_i32_0 = arith.constant 0 : i32
    %c0_i32_1 = arith.constant 0 : i32
    return %c0_i32, %c0_i32_0 : i32, i32
  }
  func.func @transform_5(%arg0: i32) -> (i32, i32) {
    %c0_i32 = arith.constant 0 : i32
    %c0_i32_0 = arith.constant 0 : i32
    %c0_i32_1 = arith.constant 0 : i32
    return %c0_i32, %c0_i32_0 : i32, i32
  }
  func.func @transform_6(%arg0: i32) -> (i32, i32) {
    %c0_i32 = arith.constant 0 : i32
    %c0_i32_0 = arith.constant 0 : i32
    %c0_i32_1 = arith.constant 0 : i32
    return %c0_i32, %c0_i32_0 : i32, i32
  }
  func.func @transform_7(%arg0: i32) -> (i32, i32, i32) {
    %c0_i32 = arith.constant 0 : i32
    %c0_i32_0 = arith.constant 0 : i32
    %c0_i32_1 = arith.constant 0 : i32
    return %arg0, %c0_i32, %c0_i32_0 : i32, i32, i32
  }
}

</mosaic_0001>

<bundles_post_ra>
// kernel: kcnn_forward.1
= control target key start
LH: loop header
LB: loop body
LE: loop exit
PB: predicated region body
PF: predicated region fallthrough
CT: control target
= control target key end

     0   :  { %12 = vsyncpa [#allocation3], 0  ;;  %s5718_s0 = inlined_call_operand.vmem [shape: bf16[2,256,32], index: 0, kind: input, shape index: {}]   ;;  %s5719_s1 = inlined_call_operand.vmem [shape: bf16[32,32], index: 1, kind: input, shape index: {}]   ;;  %s5720_s2 = inlined_call_operand.vmem [shape: bf16[3,288,32], index: 2, kind: input, shape index: {}]   ;;  %s5721_s3 = inlined_call_operand.vmem [shape: f32[4,32], index: 3, kind: input, shape index: {}]   ;;  %s5722_s4 = inlined_call_operand.vmem [shape: f32[4,32], index: 4, kind: input, shape index: {}]   ;;  %s5723_s5 = inlined_call_operand.vmem [shape: bf16[32,10], index: 5, kind: input, shape index: {}]   ;;  %s5724_s6 = inlined_call_operand.vmem [shape: f32[1,10], index: 6, kind: input, shape index: {}]   ;;  %s5725_s7 = inlined_call_operand.hbm [shape: f32[2,1,10], index: 7, kind: output, shape index: {}]  }
   0x1   :  { %14 = vsyncpa [#allocation3 + $0x1], 0  ;;  %s4502_s24 = smov 0   ;;  %s4504_s25 = smov 0  }
   0x2   :  { %s4506_s26 = smov 0   ;;  %s4508_s27 = smov 0  }
   0x3 LB: > { %s4523_s28 = sadd.s32 4294967295, %s4453_s27   ;;  %s3632_s29 = sadd.s32 4294967294, %s4453_s27   ;;  %s4453_s27 = sphi %s4508_s27, %s5737_s27   ;;  %s4449_s26 = sphi %s4506_s26, %s5736_s26   ;;  %s4445_s25 = sphi %s4504_s25, %s5735_s25   ;;  %s4441_s24 = sphi %s4502_s24, %s5734_s24  }
   0x4   : > { %s4527_s30 = sadd.s32 1, %s4453_s27   ;;  %s179_s8 = sadd.s32 1, %s4449_s26 }
   0x5   : > { %s176_s9 = ssub.s32 %s4453_s27, %s4527_s30  ;;  %p189_p0 = scmp.ne.s32.totalorder %s4449_s26, %s4445_s25 }
   0x6   : > { %p177_p1 = scmp.eq.s32.totalorder %s176_s9, 0  ;;  %p190_p2 = scmp.eq.s32.totalorder %s4523_s28, 1 }
   0x7   : > { %p195_p3 = scmp.ne.s32.totalorder %s4445_s25, %s4441_s24  ;;  %p196_p4 = scmp.eq.s32.totalorder %s3632_s29, 1 }
   0x8   : > { %s4538_s10 = scalar_select %p177_p1, %s4449_s26, %s179_s8  }
   0x9   : > { %p4540_p5 = por %p190_p2, %p189_p0  ;;  %p4544_p6 = por %p196_p4, %p195_p3 }
   0xa   : > { %p3635_p7 = scmp.ge.s32.totalorder %s4453_s27, 1  ;;  %p240_p8 = scmp.lt.s32.totalorder %s4453_s27, 3 }
   0xc   : > { %p241_p9 = pnand %p3635_p7, %p240_p8 }
   0xd   : > { %p271_p10 = scmp.lt.s32.totalorder (!%p241_p9), %s4523_s28, 1  ;;  %s4457_s22 = smov (!%p241_p9), 64  }
   0xe   : > { %244 = sbr.rel (%p241_p9) target bundleno = 1679 (0x68f), region = 48  ;;  %s4458_s23 = smov (!%p241_p9), 32  }
   0xf   : > { %s4459_s29 = smov (!%p241_p9), 96   ;;  %s269_s20 = sand.u32 (!%p241_p9), 1, %s4445_s25  }
  0x10   : > { %s3916_s9 = sshll.u32 (!%p241_p9), %s4523_s28, 4  ;;  %s270_s13 = scalar_lea.vmem (!%p241_p9), [#allocation2], %s269_s20 }
  0x11   : > { %s3577_s14 = sshll.u32 (!%p241_p9), %s270_s13, 4  ;;  %s3565_s15 = scalar_lea.sflag (!%p241_p9), [#allocation3], %s269_s20  ;;  %s5679_s14 = int_to_ptr.vmem [resolvable:$true] %s3577_s14 }
  0x12   : > { %s4461_s16 = smov (!%p241_p9), [#allocation2]  }
  0x13   : > { %v4319_v0 = vld [vmem:[%s5719_s1 + $0x8] sm:$0xff]   ;;  %v4320_v1 = vld [vmem:[%s5719_s1] sm:$0xff]   ;;  %s272_s17 = scalar_select %p271_p10, %s4523_s28, 1  ;;  %vm405_vm0 = vcmask 261120   ;;  %v4455_v19 = vmov 1983009808   ;;  %v757_v21 = vlaneseq }
  0x14   : > { %4037 = vmatprep.subr.bf16.mxu0 %v4319_v0  ;;  %v4598_v18 = vld [vmem:[%s5721_s3] ss:$0 sm:$0xff]  ;;  %v755_v20 = vunpack.c.l.s4 %v4455_v19  ;;  %v4456_v25 = vmov 0.0   ;;  %vm1747_vm1 = vcmask 1040384   ;;  %vm1807_vm2 = vcmask 1045504   ;;  %s4393_s28 = scalar_lea.vmem %s5679_s14, 16 }
  0x15   : > { %4038 = vmatpush3.bf16.msra.mxu0 %v4319_v0  ;;  %s3919_s18 = sshll.u32 %s272_s17, 7  ;;  %v4603_v23 = vld [vmem:[%s5722_s4] ss:$0 sm:$0xff]  ;;  %v1729_v26 = vrot.slane %v4456_v25, 7  ;;  %v758_v29 = vshrl.u32 %v757_v21, 7  ;;  %vm1782_vm3 = vcmask 1046528   ;;  %p4394_p11 = scmp.ne.s32.totalorder %s5679_s14, %s4393_s28 }
  0x16   : > { %4039 = vmatprep.subr.bf16.mxu0 %v4320_v1  ;;  %s4561_s21 = scalar_lea.vmem %s5718_s0, %s3919_s18  ;;  %v756_v28 = vunpack.c.0.s8 %v755_v20  ;;  %vm1665_vm4 = vcmask 1041409   ;;  %vm1667_vm5 = vcmask 1042434   ;;  %vm1669_vm6 = vcmask 1043459   ;;  %s4397_s17 = sshll.u32 %s4461_s16, 4  ;;  %s4398_s17 = int_to_ptr.vmem [resolvable:$false] %s4397_s17 }
  0x17   : > { %v4321_v2 = vld [vmem:[%s4561_s21] sm:$0xff]   ;;  %v4322_v3 = vld [vmem:[%s4561_s21 + $0x8] sm:$0xff]   ;;  %v4323_v4 = vld [vmem:[%s4561_s21 + $0x10] sm:$0xff]   ;;  %v4612_v35 = vsel %vm1747_vm1, 0.0, %v1729_v26  ;;  %v1757_v36 = vsel %vm1747_vm1, %v1729_v26, 0.0  ;;  %v4619_v43 = vsub.s32 0, %v758_v29  ;;  %p4395_p12 = pnand %p4394_p11, %p4540_p5  ;;  %p4400_p0 = scmp.lt.s32.totalorder %s5679_s14, %s4398_s17 }
  0x18   : > { %4041 = vmatprep.mubr.msk.bf16.mxu0 %vm405_vm0, %v4321_v2  ;;  %v4324_v5 = vld [vmem:[%s4561_s21 + $0x18] sm:$0xff]   ;;  %v4325_v6 = vld [vmem:[%s4561_s21 + $0x20] sm:$0xff]   ;;  %v4326_v7 = vld [vmem:[%s4561_s21 + $0x28] sm:$0xff]   ;;  %v4615_v37 = vsub.s32 %v756_v28, %v758_v29  ;;  %v1808_v45 = vrot.slane %v4612_v35, 2  ;;  %v1809_v46 = vrot.slane %v1757_v36, 2  ;;  %v1783_v52 = vrot.slane %v4612_v35, 1 }
  0x19   : > { %4040 = vmatpush3.bf16.msra.mxu0 %v4320_v1  ;;  %v4327_v8 = vld [vmem:[%s4561_s21 + $0x30] sm:$0xff]   ;;  %v4328_v9 = vld [vmem:[%s4561_s21 + $0x38] sm:$0xff]   ;;  %v4329_v10 = vld [vmem:[%s4561_s21 + $0x40] sm:$0xff]   ;;  %v1784_v53 = vrot.slane %v1757_v36, 1  ;;  %vm1671_vm7 = vcmask 1044484   ;;  %vm1673_vm8 = vcmask 1045509   ;;  %p4396_p13 = pneg %p4395_p12 }
  0x1a   : > { %v4330_v11 = vld [vmem:[%s4561_s21 + $0x48] sm:$0xff]   ;;  %v4331_v12 = vld [vmem:[%s4561_s21 + $0x50] sm:$0xff]   ;;  %v4332_v13 = vld [vmem:[%s4561_s21 + $0x58] sm:$0xff]   ;;  %v4629_v60 = vsel %vm1807_vm2, %v1808_v45, %v1809_v46  ;;  %vm1675_vm9 = vcmask 1046534   ;;  %vm1677_vm10 = vcmask 1047559   ;;  %vm2008_vm11 = vcmask 523264  }
  0x1b   : > { %v4333_v14 = vld [vmem:[%s4561_s21 + $0x60] sm:$0xff]   ;;  %v4334_v15 = vld [vmem:[%s4561_s21 + $0x68] sm:$0xff]   ;;  %v4335_v16 = vld [vmem:[%s4561_s21 + $0x70] sm:$0xff]   ;;  %vm2017_vm12 = vcmask 785408   ;;  %vm2642_vm13 = vcmask 1044480   ;;  %vm2656_vm14 = vcmask 1042432  }
  0x1c   : > { %4042 = vmatmul.mubr.msk.bf16.vlgmr.msra.gmra.mxu0 %vm405_vm0, %v4322_v3  ;;  %v4336_v17 = vld [vmem:[%s4561_s21 + $0x78] sm:$0xff]   ;;  %vm2657_vm15 = vcmask 1046532   ;;  %s4399_s18 = scalar_lea.vmem %s4398_s17, 32 }
  0x1d   : > { %4045 = vmatprep.mubr.msk.bf16.mxu0 %vm405_vm0, %v4323_v4  ;;  %p4401_p1 = scmp.lt.s32.totalorder %s4399_s18, %s4393_s28 }
  0x1f   : > { %p4402_p2 = por %p4401_p1, %p4400_p0 }
  0x21   : > { %p4403_p3 = pnand %p4402_p2, %p4396_p13 }
  0x24   : > { %4046 = vmatmul.mubr.msk.bf16.gmra.mxu0 %vm405_vm0, %v4324_v5  ;;  %v4635_v5 = vsel %vm1782_vm3, %v1783_v52, %v1784_v53 }
  0x25   : > { %4049 = vmatprep.mubr.msk.bf16.mxu0 %vm405_vm0, %v4325_v6 }
  0x2c   : > { %4050 = vmatmul.mubr.msk.bf16.gmra.mxu0 %vm405_vm0, %v4326_v7 }
  0x2d   : > { %4053 = vmatprep.mubr.msk.bf16.mxu0 %vm405_vm0, %v4327_v8 }
  0x34   : > { %4054 = vmatmul.mubr.msk.bf16.gmra.mxu0 %vm405_vm0, %v4328_v9 }
  0x35   : > { %4057 = vmatprep.mubr.msk.bf16.mxu0 %vm405_vm0, %v4329_v10 }
  0x3c   : > { %4058 = vmatmul.mubr.msk.bf16.gmra.mxu0 %vm405_vm0, %v4330_v11 }
  0x3d   : > { %4061 = vmatprep.mubr.msk.bf16.mxu0 %vm405_vm0, %v4331_v12 }
  0x44   : > { %4062 = vmatmul.mubr.msk.bf16.gmra.mxu0 %vm405_vm0, %v4332_v13 }
  0x45   : > { %4065 = vmatprep.mubr.msk.bf16.mxu0 %vm405_vm0, %v4333_v14 }
  0x4c   : > { %4066 = vmatmul.mubr.msk.bf16.gmra.mxu0 %vm405_vm0, %v4334_v15 }
  0x4d   : > { %4069 = vmatprep.mubr.msk.bf16.mxu0 %vm405_vm0, %v4335_v16 }
  0x54   : > { %4070 = vmatmul.mubr.msk.bf16.gmra.mxu0 %vm405_vm0, %v4336_v17 }
  0xdc   : > { %v4043_v22 = vpop.f32.mrf.mxu0 }
  0xdd   : > { %v623_v24 = vmul.f32 %v4043_v22, %v4598_v18 }
  0xde   : > { %v488_v27 = vpop.f32.mrf.mxu0 }
  0xdf   : > { %v659_v30 = vadd.f32 %v4603_v23, %v623_v24  ;;  %v621_v31 = vmul.f32 %v4598_v18, %v488_v27 }
  0xe0   : > { %v4044_v32 = vpop.f32.mrf.mxu0 }
  0xe1   : > { %v657_v33 = vadd.f32 %v4603_v23, %v621_v31  ;;  %v624_v34 = vmul.f32 %v4044_v32, %v4598_v18  ;;  %v691_v39 = vmax.f32 %v659_v30, 0.0 }
  0xe2   : > { %v491_v38 = vpop.f32.mrf.mxu0 }
  0xe3   : > { %v689_v40 = vmax.f32 %v657_v33, 0.0  ;;  %v660_v41 = vadd.f32 %v4603_v23, %v624_v34  ;;  %v622_v42 = vmul.f32 %v4598_v18, %v491_v38 }
  0xe4   : > { %v4047_v44 = vpop.f32.mrf.mxu0 }
  0xe5   : > { %v721_v47 = vmax.f32 %v689_v40, %v691_v39  ;;  %v658_v48 = vadd.f32 %v4603_v23, %v622_v42  ;;  %v627_v49 = vmul.f32 %v4047_v44, %v4598_v18  ;;  %v692_v50 = vmax.f32 %v660_v41, 0.0 }
  0xe6   : > { %v504_v51 = vpop.f32.mrf.mxu0 }
  0xe7   : > { %v753_v54 = vcombine.high %v721_v47, %v721_v47  ;;  %v760_v55 = vrot.slane %v721_v47, %v4615_v37  ;;  %v690_v56 = vmax.f32 %v658_v48, 0.0  ;;  %v663_v57 = vadd.f32 %v4603_v23, %v627_v49 }
  0xe8   : > { %v625_v58 = vmul.f32 %v4598_v18, %v504_v51  ;;  %v4048_v59 = vpop.f32.mrf.mxu0 }
  0xe9   : > { %v767_v61 = vrot.slane %v753_v54, %v4615_v37  ;;  %v768_v62 = vcombine.high %v760_v55, %v760_v55  ;;  %v3674_v63 = vrot.slane %v760_v55, 9  ;;  %v722_v0 = vmax.f32 %v690_v56, %v692_v50 }
  0xea   : > { %v695_v1 = vmax.f32 %v663_v57, 0.0  ;;  %v661_v2 = vadd.f32 %v4603_v23, %v625_v58  ;;  %v628_v3 = vmul.f32 %v4048_v59, %v4598_v18  ;;  %v507_v4 = vpop.f32.mrf.mxu0 }
  0xeb   : > { %v769_v6 = vcombine.high %v767_v61, %v767_v61  ;;  %v3675_v7 = vrot.slane %v768_v62, 9  ;;  %v3676_v8 = vrot.slane %v767_v61, 9  ;;  %v1281_v9 = vmax.f32 %v760_v55, %v3674_v63 }
  0xec   : > { %v770_v10 = vcombine.high %v722_v0, %v722_v0  ;;  %v777_v11 = vrot.slane %v722_v0, %v4615_v37  ;;  %v693_v12 = vmax.f32 %v661_v2, 0.0  ;;  %v664_v13 = vadd.f32 %v4603_v23, %v628_v3  ;;  %v4051_v14 = vpop.f32.mrf.mxu0 }
  0xed   : > { %v3677_v15 = vrot.slane %v769_v6, 9  ;;  %v1282_v16 = vmax.f32 %v768_v62, %v3675_v7  ;;  %v1283_v17 = vmax.f32 %v767_v61, %v3676_v8  ;;  %v1412_v19 = vrot.slane %v1281_v9, %v4619_v43 }
  0xee   : > { %v784_v20 = vrot.slane %v770_v10, %v4615_v37  ;;  %v785_v21 = vcombine.high %v777_v11, %v777_v11  ;;  %v3678_v22 = vrot.slane %v777_v11, 9  ;;  %v723_v24 = vmax.f32 %v693_v12, %v695_v1  ;;  %v520_v26 = vpop.f32.mrf.mxu0 }
  0xef   : > { %v4641_v27 = vmax.f32 %v769_v6, %v3677_v15  ;;  %v1416_v28 = vrot.slane %v1282_v16, %v4619_v43  ;;  %v1420_v29 = vrot.slane %v1283_v17, %v4619_v43  ;;  %v696_v30 = vmax.f32 %v664_v13, 0.0 }
  0xf0   : > { %v786_v31 = vcombine.high %v784_v20, %v784_v20  ;;  %v3679_v32 = vrot.slane %v785_v21, 9  ;;  %v3680_v33 = vrot.slane %v784_v20, 9  ;;  %v4645_v34 = vmax.f32 %v777_v11, %v3678_v22  ;;  %v4052_v36 = vpop.f32.mrf.mxu0 }
  0xf1   : > { %v1424_v38 = vrot.slane %v4641_v27, %v4619_v43  ;;  %v1666_v39 = vsel %vm1665_vm4, %v1416_v28, %v1412_v19  ;;  %v787_v40 = vcombine.high %v723_v24, %v723_v24  ;;  %v794_v41 = vrot.slane %v723_v24, %v4615_v37 }
  0xf2   : > { %v4652_v42 = vsel %vm1667_vm5, %v1420_v29, %v1666_v39  ;;  %v3681_v44 = vrot.slane %v786_v31, 9  ;;  %v4654_v45 = vmax.f32 %v785_v21, %v3679_v32  ;;  %v4656_v46 = vmax.f32 %v784_v20, %v3680_v33  ;;  %v523_v47 = vpop.f32.mrf.mxu0  ;;  %v4339_v39 = vld [vmem:[%s5720_s2 + $0x70] sm:$0xff]  }
  0xf3   : > { %v1428_v48 = vrot.slane %v4645_v34, %v4619_v43  ;;  %v801_v49 = vrot.slane %v787_v40, %v4615_v37  ;;  %v802_v50 = vcombine.high %v794_v41, %v794_v41  ;;  %v3682_v51 = vrot.slane %v794_v41, 9 }
  0xf4   : > { %v4661_v52 = vmax.f32 %v786_v31, %v3681_v44  ;;  %v1432_v53 = vrot.slane %v4654_v45, %v4619_v43  ;;  %v1436_v54 = vrot.slane %v4656_v46, %v4619_v43  ;;  %v626_v55 = vmul.f32 %v4598_v18, %v507_v4  ;;  %v4055_v56 = vpop.f32.mrf.mxu0 }
  0xf5   : > { %v803_v57 = vcombine.high %v801_v49, %v801_v49  ;;  %v3683_v58 = vrot.slane %v802_v50, 9  ;;  %v3684_v59 = vrot.slane %v801_v49, 9  ;;  %v1289_v61 = vmax.f32 %v794_v41, %v3682_v51 }
  0xf6   : > { %v662_v62 = vadd.f32 %v4603_v23, %v626_v55  ;;  %v631_v63 = vmul.f32 %v4051_v14, %v4598_v18  ;;  %v629_v0 = vmul.f32 %v4598_v18, %v520_v26  ;;  %v632_v1 = vmul.f32 %v4052_v36, %v4598_v18  ;;  %v536_v4 = vpop.f32.mrf.mxu0  ;;  %v4338_v36 = vld [vmem:[%s5720_s2 + $0x38] sm:$0xff]  }
  0xf7   : > { %v3685_v2 = vrot.slane %v803_v57, 9  ;;  %v1290_v3 = vmax.f32 %v802_v50, %v3683_v58  ;;  %v1291_v6 = vmax.f32 %v801_v49, %v3684_v59  ;;  %v1444_v7 = vrot.slane %v1289_v61, %v4619_v43 }
  0xf8   : > { %v694_v8 = vmax.f32 %v662_v62, 0.0  ;;  %v667_v9 = vadd.f32 %v4603_v23, %v631_v63  ;;  %v665_v10 = vadd.f32 %v4603_v23, %v629_v0  ;;  %v668_v11 = vadd.f32 %v4603_v23, %v632_v1  ;;  %v4056_v28 = vpop.f32.mrf.mxu0  ;;  %v4340_v62 = vld [vmem:[%s5720_s2 + $0x30] sm:$0xff]  }
  0xf9   : > { %v1292_v12 = vmax.f32 %v803_v57, %v3685_v2  ;;  %v1448_v13 = vrot.slane %v1290_v3, %v4619_v43  ;;  %v1452_v14 = vrot.slane %v1291_v6, %v4619_v43  ;;  %v630_v15 = vmul.f32 %v4598_v18, %v523_v47  ;;  %v4341_v3 = vld [vmem:[%s5720_s2 + $0x68] sm:$0xff]  }
  0xfa   : > { %v724_v16 = vmax.f32 %v694_v8, %v696_v30  ;;  %v699_v17 = vmax.f32 %v667_v9, 0.0  ;;  %v697_v19 = vmax.f32 %v665_v10, 0.0  ;;  %v700_v20 = vmax.f32 %v668_v11, 0.0  ;;  %v4337_v30 = vld [vmem:[%s5720_s2 + $0x78] sm:$0xff]   ;;  %v4700_v61 = vpop.f32.mrf.mxu0 }
  0xfb   : > { %v1456_v21 = vrot.slane %v1292_v12, %v4619_v43  ;;  %v1679_v22 = vsel %vm1665_vm4, %v1448_v13, %v1444_v7  ;;  %v666_v24 = vadd.f32 %v4603_v23, %v630_v15  ;;  %v635_v26 = vmul.f32 %v4055_v56, %v4598_v18  ;;  %3938 = vmatprep.subr.bf16.mxu1 %v4337_v30 }
  0xfc   : > { %v1680_v29 = vsel %vm1667_vm5, %v1452_v14, %v1679_v22  ;;  %v804_v31 = vcombine.high %v724_v16, %v724_v16  ;;  %v811_v32 = vrot.slane %v724_v16, %v4615_v37  ;;  %v725_v33 = vmax.f32 %v697_v19, %v699_v17  ;;  %3939 = vmatpush3.bf16.msra.mxu1 %v4338_v36  ;;  %v4059_v17 = vpop.f32.mrf.mxu0  ;;  %v4342_v19 = vld [vmem:[%s5720_s2 + $0x28] sm:$0xff]  }
  0xfd   : > { %v1681_v40 = vsel %vm1669_vm6, %v1456_v21, %v1680_v29  ;;  %v698_v41 = vmax.f32 %v666_v24, 0.0  ;;  %v671_v44 = vadd.f32 %v4603_v23, %v635_v26  ;;  %v633_v47 = vmul.f32 %v4598_v18, %v536_v4  ;;  %3940 = vmatprep.subr.bf16.mxu1 %v4339_v39 }
  0xfe   : > { %v818_v49 = vrot.slane %v804_v31, %v4615_v37  ;;  %v819_v50 = vcombine.high %v811_v32, %v811_v32  ;;  %v3686_v51 = vrot.slane %v811_v32, 9  ;;  %v821_v55 = vcombine.high %v725_v33, %v725_v33 }
  0xff   : > { %v828_v56 = vrot.slane %v725_v33, %v4615_v37  ;;  %v726_v57 = vmax.f32 %v698_v41, %v700_v20  ;;  %v703_v58 = vmax.f32 %v671_v44, 0.0  ;;  %v669_v59 = vadd.f32 %v4603_v23, %v633_v47 }
 0x100   : > { %v820_v63 = vcombine.high %v818_v49, %v818_v49  ;;  %v3687_v0 = vrot.slane %v819_v50, 9  ;;  %v3688_v1 = vrot.slane %v818_v49, 9  ;;  %v1293_v2 = vmax.f32 %v811_v32, %v3686_v51  ;;  %3941 = vmatpush3.bf16.msra.mxu1 %v4340_v62 }
 0x101   : > { %v835_v6 = vrot.slane %v821_v55, %v4615_v37  ;;  %v836_v7 = vcombine.high %v828_v56, %v828_v56  ;;  %v3690_v4 = vrot.slane %v828_v56, 9  ;;  %v838_v8 = vcombine.high %v726_v57, %v726_v57  ;;  %3942 = vmatprep.subr.bf16.mxu1 %v4341_v3 }
 0x102   : > { %v3689_v9 = vrot.slane %v820_v63, 9  ;;  %v4709_v10 = vmax.f32 %v819_v50, %v3687_v0  ;;  %v4711_v11 = vmax.f32 %v818_v49, %v3688_v1  ;;  %v1460_v12 = vrot.slane %v1293_v2, %v4619_v43  ;;  %v552_v49 = vpop.f32.mrf.mxu0 }
 0x103   : > { %v837_v13 = vcombine.high %v835_v6, %v835_v6  ;;  %v3691_v14 = vrot.slane %v836_v7, 9  ;;  %v3692_v15 = vrot.slane %v835_v6, 9  ;;  %v1297_v16 = vmax.f32 %v828_v56, %v3690_v4 }
 0x104   : > { %v4717_v20 = vmax.f32 %v820_v63, %v3689_v9  ;;  %v1464_v21 = vrot.slane %v4709_v10, %v4619_v43  ;;  %v1468_v22 = vrot.slane %v4711_v11, %v4619_v43  ;;  %v4724_v24 = vsel %vm1671_vm7, %v1460_v12, %v1681_v40  ;;  %3943 = vmatpush3.bf16.msra.mxu1 %v4342_v19 }
 0x105   : > { %v3693_v26 = vrot.slane %v837_v13, 9  ;;  %v1298_v29 = vmax.f32 %v836_v7, %v3691_v14  ;;  %v1299_v31 = vmax.f32 %v835_v6, %v3692_v15  ;;  %v1476_v32 = vrot.slane %v1297_v16, %v4619_v43 }
 0x106   : > { %v1472_v33 = vrot.slane %v4717_v20, %v4619_v43  ;;  %v845_v30 = vrot.slane %v726_v57, %v4615_v37  ;;  %v852_v36 = vrot.slane %v838_v8, %v4615_v37  ;;  %v701_v39 = vmax.f32 %v669_v59, 0.0  ;;  %v4060_v8 = vpop.f32.mrf.mxu0 }
 0x107   : > { %v1300_v41 = vmax.f32 %v837_v13, %v3693_v26  ;;  %v1480_v44 = vrot.slane %v1298_v29, %v4619_v43  ;;  %v1484_v40 = vrot.slane %v1299_v31, %v4619_v43  ;;  %v636_v47 = vmul.f32 %v4056_v28, %v4598_v18 }
 0x108   : > { %v853_v50 = vcombine.high %v845_v30, %v845_v30  ;;  %v854_v51 = vcombine.high %v852_v36, %v852_v36  ;;  %v3694_v55 = vrot.slane %v845_v30, 9  ;;  %v3696_v56 = vrot.slane %v852_v36, 9 }
 0x109   : > { %v1488_v62 = vrot.slane %v1300_v41, %v4619_v43  ;;  %v1686_v57 = vsel %vm1665_vm4, %v1480_v44, %v1476_v32  ;;  %v727_v63 = vmax.f32 %v701_v39, %v703_v58  ;;  %v672_v59 = vadd.f32 %v4603_v23, %v636_v47  ;;  %v4758_v44 = vpop.f32.mrf.mxu0 }
 0x10a   : > { %v1687_v0 = vsel %vm1667_vm5, %v1484_v40, %v1686_v57  ;;  %v3695_v1 = vrot.slane %v853_v50, 9  ;;  %v3697_v2 = vrot.slane %v854_v51, 9  ;;  %v1301_v3 = vmax.f32 %v845_v30, %v3694_v55 }
 0x10b   : > { %v4738_v28 = vmax.f32 %v852_v36, %v3696_v56  ;;  %v1688_v6 = vsel %vm1669_vm6, %v1488_v62, %v1687_v0  ;;  %v855_v7 = vcombine.high %v727_v63, %v727_v63  ;;  %v862_v4 = vrot.slane %v727_v63, %v4615_v37 }
 0x10c   : > { %v4742_v9 = vmax.f32 %v853_v50, %v3695_v1  ;;  %v4744_v58 = vmax.f32 %v854_v51, %v3697_v2  ;;  %v1492_v12 = vrot.slane %v1301_v3, %v4619_v43  ;;  %v704_v13 = vmax.f32 %v672_v59, 0.0  ;;  %v4778_v2 = vpop.f32.mrf.mxu0 }
 0x10d   : > { %v1500_v14 = vrot.slane %v4738_v28, %v4619_v43  ;;  %v869_v15 = vrot.slane %v855_v7, %v4615_v37  ;;  %v870_v16 = vcombine.high %v862_v4, %v862_v4  ;;  %v3698_v19 = vrot.slane %v862_v4, 9 }
 0x10e   : > { %v1496_v26 = vrot.slane %v4742_v9, %v4619_v43  ;;  %v4753_v29 = vsel %vm1671_vm7, %v1492_v12, %v1688_v6  ;;  %v634_v31 = vmul.f32 %v4598_v18, %v4700_v61  ;;  %v639_v32 = vmul.f32 %v4059_v17, %v4598_v18  ;;  %v4808_v11 = vpop.f32.mrf.mxu0 }
 0x10f   : > { %v871_v30 = vcombine.high %v869_v15, %v869_v15  ;;  %v3699_v36 = vrot.slane %v870_v16, 9  ;;  %v3700_v39 = vrot.slane %v869_v15, 9  ;;  %v1305_v41 = vmax.f32 %v862_v4, %v3698_v19 }
 0x110   : > { %v670_v40 = vadd.f32 %v4603_v23, %v634_v31  ;;  %v675_v47 = vadd.f32 %v4603_v23, %v639_v32  ;;  %v637_v50 = vmul.f32 %v4598_v18, %v552_v49  ;;  %v1440_v51 = vrot.slane %v4661_v52, %v4619_v43 }
 0x111   : > { %v3701_v55 = vrot.slane %v871_v30, 9  ;;  %v1306_v56 = vmax.f32 %v870_v16, %v3699_v36  ;;  %v1307_v61 = vmax.f32 %v869_v15, %v3700_v39  ;;  %v1508_v17 = vrot.slane %v1305_v41, %v4619_v43 }
 0x112   : > { %v702_v62 = vmax.f32 %v670_v40, 0.0  ;;  %v707_v57 = vmax.f32 %v675_v47, 0.0  ;;  %v673_v63 = vadd.f32 %v4603_v23, %v637_v50  ;;  %v1670_v59 = vsel %vm1669_vm6, %v1424_v38, %v4652_v42  ;;  %v4819_v47 = vpop.f32.mrf.mxu0 }
 0x113   : > { %v1308_v0 = vmax.f32 %v871_v30, %v3701_v55  ;;  %v1512_v49 = vrot.slane %v1306_v56, %v4619_v43  ;;  %v1516_v52 = vrot.slane %v1307_v61, %v4619_v43  ;;  %v1672_v1 = vsel %vm1671_vm7, %v1428_v48, %v1670_v59  ;;  %v4343_v61 = vld [vmem:[%s5720_s2 + $0x60] sm:$0xff]  }
 0x114   : > { %v728_v3 = vmax.f32 %v702_v62, %v704_v13  ;;  %v705_v6 = vmax.f32 %v673_v63, 0.0  ;;  %v1674_v27 = vsel %vm1673_vm8, %v1432_v53, %v1672_v1  ;;  %v1683_v38 = vsel %vm1673_vm8, %v1464_v21, %v4724_v24  ;;  %3944 = vmatprep.subr.bf16.mxu1 %v4343_v61 }
 0x115   : > { %v1520_v42 = vrot.slane %v1308_v0, %v4619_v43  ;;  %v1693_v34 = vsel %vm1665_vm4, %v1512_v49, %v1508_v17  ;;  %v1676_v48 = vsel %vm1675_vm9, %v1436_v54, %v1674_v27  ;;  %v1684_v45 = vsel %vm1675_vm9, %v1468_v22, %v1683_v38  ;;  %v4344_v17 = vld [vmem:[%s5720_s2 + $0x20] sm:$0xff]   ;;  %v4345_v0 = vld [vmem:[%s5720_s2 + $0x58] sm:$0xff]  }
 0x116   : > { %v1694_v53 = vsel %vm1667_vm5, %v1516_v52, %v1693_v34  ;;  %v872_v7 = vcombine.high %v728_v3, %v728_v3  ;;  %v879_v10 = vrot.slane %v728_v3, %v4615_v37  ;;  %v729_v21 = vmax.f32 %v705_v6, %v707_v57  ;;  %v571_v34 = vpop.f32.mrf.mxu0  ;;  %3945 = vmatpush3.bf16.msra.mxu1 %v4344_v17 }
 0x117   : > { %v1695_v24 = vsel %vm1669_vm6, %v1520_v42, %v1694_v53  ;;  %v1678_v4 = vsel %vm1677_vm10, %v1440_v51, %v1676_v48  ;;  %v1685_v46 = vsel %vm1677_vm10, %v1472_v33, %v1684_v45  ;;  %v640_v54 = vmul.f32 %v4060_v8, %v4598_v18  ;;  %v4346_v48 = vld [vmem:[%s5720_s2 + $0x18] sm:$0xff]   ;;  %3946 = vmatprep.subr.bf16.mxu1 %v4345_v0 }
 0x118   : > { %v886_v22 = vrot.slane %v872_v7, %v4615_v37  ;;  %v887_v12 = vcombine.high %v879_v10, %v879_v10  ;;  %v3702_v13 = vrot.slane %v879_v10, 9  ;;  %v889_v15 = vcombine.high %v729_v21, %v729_v21 }
 0x119   : > { %v896_v16 = vrot.slane %v729_v21, %v4615_v37  ;;  %v1730_v19 = vrot.slane %v1678_v4, 7  ;;  %v1731_v31 = vrot.slane %v1685_v46, 7  ;;  %v4813_v32 = vadd.f32 %v4603_v23, %v640_v54  ;;  %v4347_v21 = vld [vmem:[%s5720_s2 + $0x50] sm:$0xff]  }
 0x11a   : > { %v888_v30 = vcombine.high %v886_v22, %v886_v22  ;;  %v3703_v20 = vrot.slane %v887_v12, 9  ;;  %v3704_v36 = vrot.slane %v886_v22, 9  ;;  %v1309_v33 = vmax.f32 %v879_v10, %v3702_v13  ;;  %3947 = vmatpush3.bf16.msra.mxu1 %v4346_v48 }
 0x11b   : > { %v903_v8 = vrot.slane %v889_v15, %v4615_v37  ;;  %v904_v39 = vcombine.high %v896_v16, %v896_v16  ;;  %v3706_v41 = vrot.slane %v896_v16, 9  ;;  %v4817_v40 = vsel %vm1747_vm1, 0.0, %v1730_v19  ;;  %3948 = vmatprep.subr.bf16.mxu1 %v4347_v21 }
 0x11c   : > { %v3705_v50 = vrot.slane %v888_v30, 9  ;;  %v4821_v51 = vmax.f32 %v887_v12, %v3703_v20  ;;  %v4823_v55 = vmax.f32 %v886_v22, %v3704_v36  ;;  %v1524_v56 = vrot.slane %v1309_v33, %v4619_v43  ;;  %v4067_v36 = vpop.f32.mrf.mxu0 }
 0x11d   : > { %v905_v62 = vcombine.high %v903_v8, %v903_v8  ;;  %v3707_v57 = vrot.slane %v904_v39, 9  ;;  %v3708_v63 = vrot.slane %v903_v8, 9  ;;  %v1313_v59 = vmax.f32 %v896_v16, %v3706_v41  ;;  %v4348_v41 = vld [vmem:[%s5720_s2 + $0x10] sm:$0xff]  }
 0x11e   : > { %v4835_v49 = vmax.f32 %v888_v30, %v3705_v50  ;;  %v1528_v52 = vrot.slane %v4821_v51, %v4619_v43  ;;  %v1532_v1 = vrot.slane %v4823_v55, %v4619_v43  ;;  %v4842_v3 = vsel %vm1671_vm7, %v1524_v56, %v1695_v24  ;;  %3949 = vmatpush3.bf16.msra.mxu1 %v4348_v41 }
 0x11f   : > { %v3709_v6 = vrot.slane %v905_v62, 9  ;;  %v1314_v27 = vmax.f32 %v904_v39, %v3707_v57  ;;  %v1315_v38 = vmax.f32 %v903_v8, %v3708_v63  ;;  %v1540_v42 = vrot.slane %v1313_v59, %v4619_v43 }
 0x120   : > { %v1536_v45 = vrot.slane %v4835_v49, %v4619_v43  ;;  %v1758_v53 = vsel %vm1747_vm1, %v1730_v19, 0.0  ;;  %v1811_v7 = vrot.slane %v4817_v40, 2  ;;  %v4853_v10 = vsel %vm1747_vm1, 0.0, %v1731_v31 }
 0x121   : > { %v1316_v24 = vmax.f32 %v905_v62, %v3709_v6  ;;  %v1544_v4 = vrot.slane %v1314_v27, %v4619_v43  ;;  %v1548_v46 = vrot.slane %v1315_v38, %v4619_v43  ;;  %v1812_v54 = vrot.slane %v1758_v53, 2  ;;  %v584_v27 = vpop.f32.mrf.mxu0 }
 0x122   : > { %v4861_v22 = vsel %vm1747_vm1, %v1731_v31, 0.0  ;;  %v1814_v12 = vrot.slane %v4853_v10, 2  ;;  %v1786_v13 = vrot.slane %v4817_v40, 1  ;;  %v1787_v15 = vrot.slane %v1758_v53, 1 }
 0x123   : > { %v1552_v16 = vrot.slane %v1316_v24, %v4619_v43  ;;  %v1700_v19 = vsel %vm1665_vm4, %v1544_v4, %v1540_v42  ;;  %v1813_v30 = vsel %vm1807_vm2, %v1811_v7, %v1812_v54  ;;  %v1815_v20 = vrot.slane %v4861_v22, 2 }
 0x124   : > { %v1701_v33 = vsel %vm1667_vm5, %v1548_v46, %v1700_v19  ;;  %v4159_v31 = vpack.i.bf16 %v1813_v30, %v4629_v60  ;;  %v4872_v8 = vsel %vm1782_vm3, %v1786_v13, %v1787_v15  ;;  %v708_v39 = vmax.f32 %v4813_v32, 0.0 }
 0x125   : > { %v4879_v50 = vsel %vm1807_vm2, %v1814_v12, %v1815_v20  ;;  %v4154_v56 = vpack.i.bf16 %v4872_v8, %v4635_v5  ;;  %v638_v61 = vmul.f32 %v4598_v18, %v4758_v44  ;;  %v4886_v17 = vsel %vm1669_vm6, %v1552_v16, %v1701_v33  ;;  %v4349_v33 = vld [vmem:[%s5720_s2 + $0x48] sm:$0xff]  }
 0x126   : > { %4160 = vrot.lane.b32.xlu1 %v4159_v31, %s4457_s22  ;;  %v4169_v32 = vpack.i.bf16 %v4879_v50, %v1813_v30  ;;  %v643_v62 = vmul.f32 %v4778_v2, %v4598_v18  ;;  %v4164_v57 = vpack.i.bf16 %v4853_v10, %v4817_v40  ;;  %v641_v63 = vmul.f32 %v4598_v18, %v4808_v11  ;;  %v4350_v31 = vld [vmem:[%s5720_s2 + $0x8] sm:$0xff]  }
 0x127   : > { %4155 = vrot.lane.b32.xlu0 %v4154_v56, %s4458_s23  ;;  %v674_v44 = vadd.f32 %v4603_v23, %v638_v61  ;;  %v644_v59 = vmul.f32 %v4819_v47, %v4598_v18  ;;  %v642_v0 = vmul.f32 %v4598_v18, %v571_v34  ;;  %v647_v6 = vmul.f32 %v4067_v36, %v4598_v18 }
 0x128   : > { %v679_v2 = vadd.f32 %v4603_v23, %v643_v62  ;;  %v677_v38 = vadd.f32 %v4603_v23, %v641_v63  ;;  %v1504_v11 = vrot.slane %v4744_v58, %v4619_v43  ;;  %v1690_v42 = vsel %vm1673_vm8, %v1496_v26, %v4753_v29  ;;  %3950 = vmatprep.subr.bf16.mxu1 %v4349_v33 }
 0x129   : > { %v706_v47 = vmax.f32 %v674_v44, 0.0  ;;  %v680_v34 = vadd.f32 %v4603_v23, %v644_v59  ;;  %v678_v48 = vadd.f32 %v4603_v23, %v642_v0  ;;  %v4914_v53 = vadd.f32 %v4603_v23, %v647_v6  ;;  %3951 = vmatpush3.bf16.msra.mxu1 %v4350_v31 }
 0x12a   : > { %v711_v7 = vmax.f32 %v679_v2, 0.0  ;;  %4165 = vrot.lane.b32.xlu1 %v4164_v57, %s4459_s29  ;;  %v709_v58 = vmax.f32 %v677_v38, 0.0  ;;  %v1691_v9 = vsel %vm1675_vm9, %v1500_v14, %v1690_v42  ;;  %v645_v26 = vmul.f32 %v4598_v18, %v584_v27  ;;  %v4068_v42 = vpop.f32.mrf.mxu0 }
 0x12b   : > { %v730_v29 = vmax.f32 %v706_v47, %v708_v39  ;;  %4170 = vrot.lane.b32.xlu0 %v4169_v32, %s4458_s23  ;;  %v712_v21 = vmax.f32 %v680_v34, 0.0  ;;  %v710_v24 = vmax.f32 %v678_v48, 0.0  ;;  %v715_v4 = vmax.f32 %v4914_v53, 0.0 }
 0x12c   : > { %v731_v46 = vmax.f32 %v709_v58, %v711_v7  ;;  %v4925_v54 = vsel %vm1677_vm10, %v1504_v11, %v1691_v9  ;;  %v681_v12 = vadd.f32 %v4603_v23, %v645_v26  ;;  %v1789_v13 = vrot.slane %v4853_v10, 1 }
 0x12d   : > { %v906_v28 = vcombine.high %v730_v29, %v730_v29  ;;  %v913_v14 = vrot.slane %v730_v29, %v4615_v37  ;;  %v732_v15 = vmax.f32 %v710_v24, %v712_v21  ;;  %v1732_v16 = vrot.slane %v4925_v54, 7 }
 0x12e   : > { %v923_v19 = vcombine.high %v731_v46, %v731_v46  ;;  %v930_v30 = vrot.slane %v731_v46, %v4615_v37  ;;  %v713_v20 = vmax.f32 %v681_v12, 0.0  ;;  %v1790_v36 = vrot.slane %v4861_v22, 1 }
 0x12f   : > { %v920_v39 = vrot.slane %v906_v28, %v4615_v37  ;;  %v921_v41 = vcombine.high %v913_v14, %v913_v14  ;;  %v3710_v56 = vrot.slane %v913_v14, 9  ;;  %v940_v61 = vcombine.high %v732_v15, %v732_v15 }
 0x130   : > { %v937_v32 = vrot.slane %v923_v19, %v4615_v37  ;;  %v938_v62 = vcombine.high %v930_v30, %v930_v30  ;;  %v3714_v57 = vrot.slane %v930_v30, 9  ;;  %v947_v63 = vrot.slane %v732_v15, %v4615_v37  ;;  %v587_v19 = vpop.f32.mrf.mxu0 }
 0x131   : > { %v922_v44 = vcombine.high %v920_v39, %v920_v39  ;;  %v3711_v59 = vrot.slane %v921_v41, 9  ;;  %v3712_v0 = vrot.slane %v920_v39, 9  ;;  %v1317_v6 = vmax.f32 %v913_v14, %v3710_v56 }
 0x132   : > { %v939_v27 = vcombine.high %v937_v32, %v937_v32  ;;  %v3715_v2 = vrot.slane %v938_v62, 9  ;;  %v3716_v38 = vrot.slane %v937_v32, 9  ;;  %v1321_v11 = vmax.f32 %v930_v30, %v3714_v57 }
 0x133   : > { %v3713_v47 = vrot.slane %v922_v44, 9  ;;  %v4942_v34 = vmax.f32 %v921_v41, %v3711_v59  ;;  %v4944_v48 = vmax.f32 %v920_v39, %v3712_v0  ;;  %v1556_v53 = vrot.slane %v1317_v6, %v4619_v43  ;;  %v4351_v59 = vld [vmem:[%s5720_s2 + $0x40] sm:$0xff]  }
 0x134   : > { %v3717_v7 = vrot.slane %v939_v27, 9  ;;  %v1322_v58 = vmax.f32 %v938_v62, %v3715_v2  ;;  %v1323_v9 = vmax.f32 %v937_v32, %v3716_v38  ;;  %v1572_v26 = vrot.slane %v1321_v11, %v4619_v43  ;;  %v4071_v2 = vpop.f32.mrf.mxu0  ;;  %3952 = vmatprep.subr.bf16.mxu1 %v4351_v59 }
 0x135   : > { %v4948_v29 = vmax.f32 %v922_v44, %v3713_v47  ;;  %v1560_v21 = vrot.slane %v4942_v34, %v4619_v43  ;;  %v1564_v24 = vrot.slane %v4944_v48, %v4619_v43  ;;  %v4956_v46 = vsel %vm1671_vm7, %v1556_v53, %v4886_v17 }
 0x136   : > { %v1324_v12 = vmax.f32 %v939_v27, %v3717_v7  ;;  %v1576_v28 = vrot.slane %v1322_v58, %v4619_v43  ;;  %v1580_v14 = vrot.slane %v1323_v9, %v4619_v43  ;;  %v954_v15 = vrot.slane %v940_v61, %v4615_v37  ;;  %v600_v22 = vpop.f32.mrf.mxu0 }
 0x137   : > { %v955_v30 = vcombine.high %v947_v63, %v947_v63  ;;  %v3718_v33 = vrot.slane %v947_v63, 9  ;;  %v4964_v31 = vsel %vm1747_vm1, 0.0, %v1732_v16  ;;  %v733_v39 = vmax.f32 %v713_v20, %v715_v4  ;;  %v4352_v4 = vld [vmem:[%s5720_s2] sm:$0xff]  }
 0x138   : > { %v1584_v41 = vrot.slane %v1324_v12, %v4619_v43  ;;  %v1707_v17 = vsel %vm1665_vm4, %v1576_v28, %v1572_v26  ;;  %v956_v56 = vcombine.high %v954_v15, %v954_v15  ;;  %v3720_v32 = vrot.slane %v954_v15, 9  ;;  %3953 = vmatpush3.bf16.msra.mxu1 %v4352_v4  ;;  %v4072_v4 = vpop.f32.mrf.mxu0 }
 0x139   : > { %v1708_v62 = vsel %vm1667_vm5, %v1580_v14, %v1707_v17  ;;  %v3719_v57 = vrot.slane %v955_v30, 9  ;;  %v1325_v44 = vmax.f32 %v947_v63, %v3718_v33  ;;  %v4174_v61 = vpack.i.bf16 %v4964_v31, %v4853_v10 }
 0x13a   : > { %v3721_v20 = vrot.slane %v956_v56, 9  ;;  %v4977_v0 = vmax.f32 %v954_v15, %v3720_v32  ;;  %v1709_v6 = vsel %vm1669_vm6, %v1584_v41, %v1708_v62  ;;  %v957_v27 = vcombine.high %v733_v39, %v733_v39 }
 0x13b   : > { %v4980_v38 = vmax.f32 %v955_v30, %v3719_v57  ;;  %v1588_v63 = vrot.slane %v1325_v44, %v4619_v43  ;;  %4175 = vrot.lane.b32.xlu1 %v4174_v61, %s4457_s22  ;;  %v964_v11 = vrot.slane %v733_v39, %v4615_v37  ;;  %v1760_v47 = vsel %vm1747_vm1, %v1732_v16, 0.0 }
 0x13c   : > { %v4988_v53 = vmax.f32 %v956_v56, %v3721_v20  ;;  %v1596_v7 = vrot.slane %v4977_v0, %v4619_v43  ;;  %v971_v58 = vrot.slane %v957_v27, %v4615_v37  ;;  %v4998_v9 = vsel %vm1782_vm3, %v1789_v13, %v1790_v36 }
 0x13d   : > { %v1592_v54 = vrot.slane %v4980_v38, %v4619_v43  ;;  %v5003_v16 = vsel %vm1671_vm7, %v1588_v63, %v1709_v6  ;;  %v972_v26 = vcombine.high %v964_v11, %v964_v11  ;;  %v3722_v12 = vrot.slane %v964_v11, 9 }
 0x13e   : > { %v973_v28 = vcombine.high %v971_v58, %v971_v58  ;;  %v3724_v14 = vrot.slane %v971_v58, 9  ;;  %v1792_v15 = vrot.slane %v4964_v31, 1  ;;  %v1793_v30 = vrot.slane %v1760_v47, 1 }
 0x13f   : > { %v3723_v33 = vrot.slane %v972_v26, 9  ;;  %v1329_v39 = vmax.f32 %v964_v11, %v3722_v12  ;;  %v648_v13 = vmul.f32 %v4068_v42, %v4598_v18  ;;  %v646_v36 = vmul.f32 %v4598_v18, %v587_v19 }
 0x140   : > { %v3725_v41 = vrot.slane %v973_v28, 9  ;;  %v1331_v17 = vmax.f32 %v971_v58, %v3724_v14  ;;  %v5009_v56 = vsel %vm1782_vm3, %v1792_v15, %v1793_v30  ;;  %v651_v32 = vmul.f32 %v4071_v2, %v4598_v18 }
 0x141   : > { %v1330_v62 = vmax.f32 %v972_v26, %v3723_v33  ;;  %v1604_v57 = vrot.slane %v1329_v39, %v4619_v43  ;;  %v4179_v44 = vpack.i.bf16 %v5009_v56, %v4998_v9  ;;  %v684_v61 = vadd.f32 %v4603_v23, %v648_v13 }
 0x142   : > { %v1332_v59 = vmax.f32 %v973_v28, %v3725_v41  ;;  %v1612_v42 = vrot.slane %v1331_v17, %v4619_v43  ;;  %v682_v19 = vadd.f32 %v4603_v23, %v646_v36  ;;  %v687_v27 = vadd.f32 %v4603_v23, %v651_v32 }
 0x143   : > { %v1608_v20 = vrot.slane %v1330_v62, %v4619_v43  ;;  %4180 = vrot.lane.b32.xlu0 %v4179_v44, %s4459_s29  ;;  %v716_v6 = vmax.f32 %v684_v61, 0.0  ;;  %v1817_v2 = vrot.slane %v4964_v31, 2  ;;  %4185 = vrot.lane.b32.xlu1 %v4179_v44, %s4458_s23  ;;  %v1818_v58 = vrot.slane %v1760_v47, 2 }
 0x144   : > { %v1616_v63 = vrot.slane %v1332_v59, %v4619_v43  ;;  %v714_v11 = vmax.f32 %v682_v19, 0.0  ;;  %v649_v26 = vmul.f32 %v4598_v18, %v600_v22  ;;  %v719_v28 = vmax.f32 %v687_v27, 0.0  ;;  %v603_v22 = vpop.f32.mrf.mxu0 }
 0x145   : > { %v1714_v12 = vsel %vm1665_vm4, %v1608_v20, %v1604_v57  ;;  %v1697_v14 = vsel %vm1673_vm8, %v1528_v52, %v4842_v3  ;;  %v652_v15 = vmul.f32 %v4072_v4, %v4598_v18  ;;  %v5034_v39 = vsel %vm1807_vm2, %v1817_v2, %v1818_v58 }
 0x146   : > { %v1715_v30 = vsel %vm1667_vm5, %v1612_v42, %v1714_v12  ;;  %v734_v33 = vmax.f32 %v714_v11, %v716_v6  ;;  %v685_v47 = vadd.f32 %v4603_v23, %v649_v26  ;;  %v4189_v36 = vpack.i.bf16 %v5034_v39, %v4879_v50 }
 0x147   : > { %v1716_v13 = vsel %vm1669_vm6, %v1616_v63, %v1715_v30  ;;  %v1698_v51 = vsel %vm1675_vm9, %v1532_v1, %v1697_v14  ;;  %v688_v52 = vadd.f32 %v4603_v23, %v652_v15  ;;  %v650_v44 = vmul.f32 %v4598_v18, %v603_v22 }
 0x148   : > { %v974_v3 = vcombine.high %v734_v33, %v734_v33  ;;  %v981_v41 = vrot.slane %v734_v33, %v4615_v37  ;;  %v717_v17 = vmax.f32 %v685_v47, 0.0  ;;  %v1699_v32 = vsel %vm1677_vm10, %v1536_v45, %v1698_v51  ;;  %4190 = vrot.lane.b32.xlu1 %v4189_v36, %s4457_s22 }
 0x149   : > { %v1733_v62 = vrot.slane %v1699_v32, 7  ;;  %v720_v57 = vmax.f32 %v688_v52, 0.0  ;;  %v1568_v55 = vrot.slane %v4948_v29, %v4619_v43  ;;  %v686_v45 = vadd.f32 %v4603_v23, %v650_v44 }
 0x14a   : > { %v988_v1 = vrot.slane %v974_v3, %v4615_v37  ;;  %v989_v61 = vcombine.high %v981_v41, %v981_v41  ;;  %v3726_v59 = vrot.slane %v981_v41, 9  ;;  %v735_v42 = vmax.f32 %v717_v17, %v719_v28 }
 0x14b   : > { %v5056_v19 = vsel %vm1747_vm1, 0.0, %v1733_v62  ;;  %v1761_v49 = vsel %vm1747_vm1, %v1733_v62, 0.0  ;;  %v1704_v18 = vsel %vm1673_vm8, %v1560_v21, %v4956_v46 }
 0x14c   : > { %v990_v4 = vcombine.high %v988_v1, %v988_v1  ;;  %v3727_v29 = vrot.slane %v989_v61, 9  ;;  %v3728_v20 = vrot.slane %v988_v1, 9  ;;  %v1333_v6 = vmax.f32 %v981_v41, %v3726_v59 }
 0x14d   : > { %v991_v27 = vcombine.high %v735_v42, %v735_v42  ;;  %v998_v2 = vrot.slane %v735_v42, %v4615_v37  ;;  %v1820_v63 = vrot.slane %v5056_v19, 2  ;;  %v1821_v11 = vrot.slane %v1761_v49, 2 }
 0x14e   : > { %v3729_v58 = vrot.slane %v990_v4, 9  ;;  %v5067_v26 = vmax.f32 %v989_v61, %v3727_v29  ;;  %v5069_v23 = vmax.f32 %v988_v1, %v3728_v20  ;;  %v1620_v12 = vrot.slane %v1333_v6, %v4619_v43 }
 0x14f   : > { %v1005_v34 = vrot.slane %v991_v27, %v4615_v37  ;;  %v1006_v21 = vcombine.high %v998_v2, %v998_v2  ;;  %v3730_v46 = vrot.slane %v998_v2, 9  ;;  %v5074_v28 = vsel %vm1807_vm2, %v1820_v63, %v1821_v11 }
 0x150   : > { %v5076_v14 = vmax.f32 %v990_v4, %v3729_v58  ;;  %v1624_v15 = vrot.slane %v5067_v26, %v4619_v43  ;;  %v1628_v30 = vrot.slane %v5069_v23, %v4619_v43  ;;  %v5083_v33 = vsel %vm1671_vm7, %v1620_v12, %v1716_v13 }
 0x151   : > { %v1007_v47 = vcombine.high %v1005_v34, %v1005_v34  ;;  %v3731_v22 = vrot.slane %v1006_v21, 9  ;;  %v3732_v36 = vrot.slane %v1005_v34, 9  ;;  %v1337_v51 = vmax.f32 %v998_v2, %v3730_v46 }
 0x152   : > { %v4199_v52 = vpack.i.bf16 %v5074_v28, %v5034_v39  ;;  %v4194_v3 = vpack.i.bf16 %v5056_v19, %v4964_v31  ;;  %v718_v41 = vmax.f32 %v686_v45, 0.0  ;;  %v1705_v17 = vsel %vm1675_vm9, %v1564_v24, %v1704_v18 }
 0x153   : > { %v3733_v32 = vrot.slane %v1007_v47, 9  ;;  %v1338_v62 = vmax.f32 %v1006_v21, %v3731_v22  ;;  %v1339_v13 = vmax.f32 %v1005_v34, %v3732_v36  ;;  %v1636_v44 = vrot.slane %v1337_v51, %v4619_v43 }
 0x154   : > { %4200 = vrot.lane.b32.xlu0 %v4199_v52, %s4458_s23  ;;  %4195 = vrot.lane.b32.xlu1 %v4194_v3, %s4459_s29  ;;  %v736_v1 = vmax.f32 %v718_v41, %v720_v57  ;;  %v1706_v61 = vsel %vm1677_vm10, %v1568_v55, %v1705_v17  ;;  %v1795_v59 = vrot.slane %v5056_v19, 1  ;;  %v1796_v42 = vrot.slane %v1761_v49, 1 }
 0x155   : > { %v1340_v45 = vmax.f32 %v1007_v47, %v3733_v32  ;;  %v1640_v48 = vrot.slane %v1338_v62, %v4619_v43  ;;  %v1644_v24 = vrot.slane %v1339_v13, %v4619_v43  ;;  %v1734_v18 = vrot.slane %v1706_v61, 7 }
 0x156   : > { %v1008_v4 = vcombine.high %v736_v1, %v736_v1  ;;  %v1015_v29 = vrot.slane %v736_v1, %v4615_v37  ;;  %v5102_v20 = vsel %vm1782_vm3, %v1795_v59, %v1796_v42  ;;  %v1600_v57 = vrot.slane %v4988_v53, %v4619_v43 }
 0x157   : > { %v1648_v55 = vrot.slane %v1340_v45, %v4619_v43  ;;  %v1721_v6 = vsel %vm1665_vm4, %v1640_v48, %v1636_v44  ;;  %v5109_v49 = vsel %vm1747_vm1, 0.0, %v1734_v18  ;;  %v1762_v27 = vsel %vm1747_vm1, %v1734_v18, 0.0 }
 0x158   : > { %v1722_v2 = vsel %vm1667_vm5, %v1644_v24, %v1721_v6  ;;  %v1022_v63 = vrot.slane %v1008_v4, %v4615_v37  ;;  %v1023_v11 = vcombine.high %v1015_v29, %v1015_v29  ;;  %v3734_v58 = vrot.slane %v1015_v29, 9 }
 0x159   : > { %v4204_v12 = vpack.i.bf16 %v5109_v49, %v5056_v19  ;;  %v1798_v53 = vrot.slane %v5109_v49, 1  ;;  %v1799_v34 = vrot.slane %v1762_v27, 1  ;;  %v1823_v21 = vrot.slane %v5109_v49, 2 }
 0x15a   : > { %v1024_v46 = vcombine.high %v1022_v63, %v1022_v63  ;;  %v3735_v47 = vrot.slane %v1023_v11, 9  ;;  %v3736_v22 = vrot.slane %v1022_v63, 9  ;;  %v1341_v36 = vmax.f32 %v1015_v29, %v3734_v58 }
 0x15b   : > { %4205 = vrot.lane.b32.xlu0 %v4204_v12, %s4457_s22  ;;  %v5120_v51 = vsel %vm1782_vm3, %v1798_v53, %v1799_v34  ;;  %v1824_v52 = vrot.slane %v1762_v27, 2  ;;  %v1711_v3 = vsel %vm1673_vm8, %v1592_v54, %v5003_v16  ;;  %v1632_v41 = vrot.slane %v5076_v14, %v4619_v43  ;;  %v5142_v54 = vld [vmem:[%s5720_s2 + $0x88] sm:$0xff]  }
 0x15c   : > { %v3737_v17 = vrot.slane %v1024_v46, 9  ;;  %v1342_v32 = vmax.f32 %v1023_v11, %v3735_v47  ;;  %v1343_v62 = vmax.f32 %v1022_v63, %v3736_v22  ;;  %v1652_v13 = vrot.slane %v1341_v36, %v4619_v43  ;;  %4073 = vmatprep.subr.bf16.mxu1 %v5142_v54 }
 0x15d   : > { %v4214_v44 = vpack.i.bf16 %v5120_v51, %v5102_v20  ;;  %v5133_v1 = vsel %vm1807_vm2, %v1823_v21, %v1824_v52  ;;  %v1712_v38 = vsel %vm1675_vm9, %v1596_v7, %v1711_v3  ;;  %v1718_v0 = vsel %vm1673_vm8, %v1624_v15, %v5083_v33 }
 0x15e   : > { %v1344_v16 = vmax.f32 %v1024_v46, %v3737_v17  ;;  %v1656_v14 = vrot.slane %v1342_v32, %v4619_v43  ;;  %v2055_v61 = vpack.c.bf16 %v5133_v1, %v5074_v28  ;;  %v1713_v59 = vsel %vm1677_vm10, %v1600_v57, %v1712_v38 }
 0x15f   : > { %4215 = vrot.lane.b32.xlu1 %v4214_v44, %s4458_s23  ;;  %4210 = vrot.lane.b32.xlu0 %v4214_v44, %s4459_s29  ;;  %v1660_v7 = vrot.slane %v1343_v62, %v4619_v43  ;;  %v1735_v42 = vrot.slane %v1713_v59, 7  ;;  %v1719_v45 = vsel %vm1675_vm9, %v1628_v30, %v1718_v0  ;;  %v1723_v48 = vsel %vm1669_vm6, %v1648_v55, %v1722_v2 }
 0x160   : > { %v4219_v24 = vpack.i.bf16 %v5133_v1, %v5074_v28  ;;  %v1720_v18 = vsel %vm1677_vm10, %v1632_v41, %v1719_v45  ;;  %v1724_v26 = vsel %vm1671_vm7, %v1652_v13, %v1723_v48  ;;  %v2052_v15 = vpack.c.bf16 %v5034_v39, %v4879_v50  ;;  %v4355_v50 = vld [vmem:[%s5720_s2 + $0x108] sm:$0xff]   ;;  %v4357_v28 = vld [vmem:[%s5720_s2 + $0x100] sm:$0xff]  }
 0x161   : > { %v5169_v33 = vsel %vm1747_vm1, 0.0, %v1735_v42  ;;  %v1763_v23 = vsel %vm1747_vm1, %v1735_v42, 0.0  ;;  %v1736_v30 = vrot.slane %v1720_v18, 7  ;;  %v1725_v4 = vsel %vm1673_vm8, %v1656_v14, %v1724_v26  ;;  %v4356_v39 = vld [vmem:[%s5720_s2 + $0xc8] sm:$0xff]   ;;  %3984 = vmatprep.subr.bf16.mxu0 %v4355_v50  ;;  %vm5424_vm8 = vmor %vm2656_vm14, %vm2657_vm15 }
 0x162   : > { %v1826_v29 = vrot.slane %v5169_v33, 2  ;;  %v1827_v57 = vrot.slane %v1763_v23, 2  ;;  %v1801_v55 = vrot.slane %v5169_v33, 1  ;;  %v1664_v6 = vrot.slane %v1344_v16, %v4619_v43  ;;  %3985 = vmatpush3.bf16.msra.mxu0 %v4356_v39 }
 0x163   : > { %4220 = vrot.lane.b32.xlu1 %v4219_v24, %s4457_s22  ;;  %v5178_v27 = vsel %vm1747_vm1, 0.0, %v1736_v30  ;;  %v1764_v2 = vsel %vm1747_vm1, %v1736_v30, 0.0  ;;  %v1802_v63 = vrot.slane %v1763_v23, 1  ;;  %v1726_v11 = vsel %vm1675_vm9, %v1660_v7, %v1725_v4  ;;  %3986 = vmatprep.subr.bf16.mxu0 %v4357_v28 }
 0x164   : > { %v4224_v58 = vpack.i.bf16 %v5169_v33, %v5109_v49  ;;  %v5185_v12 = vsel %vm1807_vm2, %v1826_v29, %v1827_v57  ;;  %v1804_v53 = vrot.slane %v5178_v27, 1  ;;  %v1805_v34 = vrot.slane %v1764_v2, 1 }
 0x165   : > { %v4229_v21 = vpack.i.bf16 %v5185_v12, %v5133_v1  ;;  %v1829_v46 = vrot.slane %v5178_v27, 2  ;;  %v1830_v47 = vrot.slane %v1764_v2, 2  ;;  %v5193_v22 = vsel %vm1782_vm3, %v1801_v55, %v1802_v63  ;;  %v4359_v1 = vld [vmem:[%s5720_s2 + $0xf8] sm:$0xff]  }
 0x166   : > { %v5196_v36 = vsel %vm1782_vm3, %v1804_v53, %v1805_v34  ;;  %v1727_v52 = vsel %vm1677_vm10, %v1664_v6, %v1726_v11  ;;  %v4234_v3 = vpack.i.bf16 %v5178_v27, %v5169_v33  ;;  %v5366_v39 = vsel %vm2642_vm13, %v4612_v35, 0.0 }
 0x167   : > { %4225 = vrot.lane.b32.xlu1 %v4224_v58, %s4459_s29  ;;  %4230 = vrot.lane.b32.xlu0 %v4229_v21, %s4458_s23  ;;  %v4244_v41 = vpack.i.bf16 %v5196_v36, %v5193_v22  ;;  %v5205_v17 = vsel %vm1807_vm2, %v1829_v46, %v1830_v47  ;;  %v1737_v32 = vrot.slane %v1727_v52, 7 }
 0x168   : > { %v2058_v62 = vpack.c.bf16 %v5205_v17, %v5185_v12  ;;  %v4249_v38 = vpack.i.bf16 %v5205_v17, %v5185_v12  ;;  %v4362_v12 = vld [vmem:[%s5720_s2 + $0xb0] sm:$0xff]  }
 0x169   : > { %v1756_v13 = vsel %vm1747_vm1, 0.0, %v1737_v32  ;;  %v1765_v44 = vsel %vm1747_vm1, %v1737_v32, 0.0 }
 0x16a   : > { %v1845_v16 = vrot.slane %v1756_v13, 2  ;;  %v1846_v14 = vrot.slane %v1765_v44, 2  ;;  %v4254_v59 = vpack.i.bf16 %v4612_v35, %v1756_v13  ;;  %v4269_v0 = vpack.i.bf16 %v1756_v13, %v5178_v27 }
 0x16b   : > { %4245 = vrot.lane.b32.xlu1 %v4244_v41, %s4458_s23  ;;  %4235 = vrot.lane.b32.xlu0 %v4234_v3, %s4457_s22  ;;  %v1834_v42 = vrot.slane %v1756_v13, 1  ;;  %v1835_v45 = vrot.slane %v1765_v44, 1 }
 0x16c   : > { %v5220_v7 = vsel %vm1807_vm2, %v1845_v16, %v1846_v14  ;;  %vm2675_vm2 = vcmask 1041408  }
 0x16d   : > { %v4259_v48 = vpack.i.bf16 %v5220_v7, %v5205_v17  ;;  %v5227_v24 = vsel %vm1782_vm3, %v1834_v42, %v1835_v45  ;;  %v4363_v17 = vld [vmem:[%s5720_s2 + $0xe8] sm:$0xff]   ;;  %vm2676_vm3 = vcmask 1045508  }
 0x16e   : > { %v4264_v18 = vpack.i.bf16 %v4635_v5, %v5227_v24  ;;  %vm5460_vm10 = vmor %vm2675_vm2, %vm2676_vm3 }
 0x16f   : > { %4250 = vrot.lane.b32.xlu1 %v4249_v38, %s4457_s22  ;;  %4240 = vrot.lane.b32.xlu0 %v4244_v41, %s4459_s29 }
 0x173   : > { %4270 = vrot.lane.b32.xlu1 %v4269_v0, %s4459_s29  ;;  %4255 = vrot.lane.b32.xlu0 %v4254_v59, %s4457_s22 }
 0x177   : > { %4260 = vrot.lane.b32.xlu0 %v4259_v48, %s4458_s23 }
 0x17b   : > { %4265 = vrot.lane.b32.xlu0 %v4264_v18, %s4459_s29 }
 0x198   : > { %v4161_v26 = vpop.permute.xlu1 %4160 }
 0x199   : > { %v4156_v23 = vpop.permute.xlu0 %4155  ;;  %v4163_v6 = vunpack.i.h.bf16 %v4161_v26  ;;  %v4162_v2 = vunpack.i.l.bf16 %v4161_v26 }
 0x19a   : > { %v4158_v4 = vunpack.i.h.bf16 %v4156_v23  ;;  %v4157_v29 = vunpack.i.l.bf16 %v4156_v23 }
 0x19c   : > { %v4166_v30 = vpop.permute.xlu1 %4165  ;;  %v2001_v63 = vsel %vm405_vm0, %v4817_v40, %v4158_v4  ;;  %v2000_v11 = vsel %vm405_vm0, %v4612_v35, %v4157_v29 }
 0x19d   : > { %v4171_v57 = vpop.permute.xlu0 %4170  ;;  %v4168_v53 = vunpack.i.h.bf16 %v4166_v30  ;;  %v4167_v34 = vunpack.i.l.bf16 %v4166_v30  ;;  %v2009_v52 = vsel %vm2008_vm11, %v2000_v11, %v4162_v2  ;;  %v2010_v3 = vsel %vm2008_vm11, %v2001_v63, %v4163_v6 }
 0x19e   : > { %v4173_v58 = vunpack.i.h.bf16 %v4171_v57  ;;  %v4172_v5 = vunpack.i.l.bf16 %v4171_v57 }
 0x19f   : > { %v2018_v16 = vsel %vm2017_vm12, %v2009_v52, %v4167_v34  ;;  %v2019_v14 = vsel %vm2017_vm12, %v2010_v3, %v4168_v53 }
 0x1a0   : > { %v2026_v40 = vsel %vm405_vm0, %v4872_v8, %v4172_v5  ;;  %v2027_v13 = vsel %vm405_vm0, %v4998_v9, %v4173_v58  ;;  %v2050_v45 = vpack.c.bf16 %v2019_v14, %v2018_v16  ;;  %v4354_v8 = vld [vmem:[%s5720_s2 + $0x80] sm:$0xff]  }
 0x1ad   : > { %v4176_v55 = vpop.permute.xlu1 %4175 }
 0x1ae   : > { %v4178_v21 = vunpack.i.h.bf16 %v4176_v55  ;;  %v4177_v46 = vunpack.i.l.bf16 %v4176_v55 }
 0x1b0   : > { %v2034_v44 = vsel %vm2008_vm11, %v2026_v40, %v4177_v46  ;;  %v2035_v38 = vsel %vm2008_vm11, %v2027_v13, %v4178_v21 }
 0x1b5   : > { %v4181_v47 = vpop.permute.xlu0 %4180  ;;  %v4186_v9 = vpop.permute.xlu1 %4185 }
 0x1b6   : > { %v4183_v41 = vunpack.i.h.bf16 %v4181_v47  ;;  %v4182_v32 = vunpack.i.l.bf16 %v4181_v47  ;;  %v4188_v26 = vunpack.i.h.bf16 %v4186_v9  ;;  %v4187_v23 = vunpack.i.l.bf16 %v4186_v9 }
 0x1b8   : > { %v2042_v59 = vsel %vm2017_vm12, %v2034_v44, %v4182_v32  ;;  %v2043_v0 = vsel %vm2017_vm12, %v2035_v38, %v4183_v41  ;;  %v2002_v5 = vsel %vm405_vm0, %v4853_v10, %v4187_v23 }
 0x1b9   : > { %v2051_v42 = vpack.c.bf16 %v2043_v0, %v2042_v59 }
 0x1ba   : > { %v4191_v48 = vpop.permute.xlu1 %4190 }
 0x1bb   : > { %2250 = vmatprep.mubr.bf16.mxu1 %v2051_v42  ;;  %v4193_v4 = vunpack.i.h.bf16 %v4191_v48  ;;  %v4192_v29 = vunpack.i.l.bf16 %v4191_v48 }
 0x1bc   : > { %2251 = vmatmul.mubr.bf16.vlgmr.msra.gmra.mxu1 %v2050_v45 }
 0x1bd   : > { %4074 = vmatpush3.bf16.msra.mxu1 %v5142_v54  ;;  %v2003_v54 = vsel %vm405_vm0, %v4964_v31, %v4188_v26  ;;  %v2011_v53 = vsel %vm2008_vm11, %v2002_v5, %v4192_v29 }
 0x1be   : > { %4075 = vmatprep.subr.bf16.mxu1 %v4354_v8  ;;  %v2012_v34 = vsel %vm2008_vm11, %v2003_v54, %v4193_v4 }
 0x1c1   : > { %4076 = vmatpush3.bf16.msra.mxu1 %v4354_v8 }
 0x1c6   : > { %v4201_v18 = vpop.permute.xlu0 %4200  ;;  %v4196_v30 = vpop.permute.xlu1 %4195 }
 0x1c7   : > { %v4203_v55 = vunpack.i.h.bf16 %v4201_v18  ;;  %v4202_v6 = vunpack.i.l.bf16 %v4201_v18  ;;  %v4198_v2 = vunpack.i.h.bf16 %v4196_v30  ;;  %v4197_v63 = vunpack.i.l.bf16 %v4196_v30 }
 0x1c9   : > { %v2028_v47 = vsel %vm405_vm0, %v5009_v56, %v4202_v6  ;;  %v2029_v52 = vsel %vm405_vm0, %v5102_v20, %v4203_v55  ;;  %v2020_v10 = vsel %vm2017_vm12, %v2011_v53, %v4197_v63  ;;  %v2021_v40 = vsel %vm2017_vm12, %v2012_v34, %v4198_v2 }
 0x1ca   : > { %v2053_v56 = vpack.c.bf16 %v2021_v40, %v2020_v10 }
 0x1cd   : > { %v4206_v57 = vpop.permute.xlu0 %4205 }
 0x1ce   : > { %v4208_v11 = vunpack.i.h.bf16 %v4206_v57  ;;  %v4207_v58 = vunpack.i.l.bf16 %v4206_v57 }
 0x1d0   : > { %v2037_v32 = vsel %vm2008_vm11, %v2029_v52, %v4208_v11  ;;  %v2036_v31 = vsel %vm2008_vm11, %v2028_v47, %v4207_v58 }
 0x1d1   : > { %v4216_v21 = vpop.permute.xlu1 %4215  ;;  %v4211_v46 = vpop.permute.xlu0 %4210 }
 0x1d2   : > { %v4213_v3 = vunpack.i.h.bf16 %v4211_v46  ;;  %v4212_v41 = vunpack.i.l.bf16 %v4211_v46  ;;  %v4218_v59 = vunpack.i.h.bf16 %v4216_v21  ;;  %v4217_v0 = vunpack.i.l.bf16 %v4216_v21 }
 0x1d4   : > { %v2044_v13 = vsel %vm2017_vm12, %v2036_v31, %v4212_v41  ;;  %v2045_v44 = vsel %vm2017_vm12, %v2037_v32, %v4213_v3  ;;  %v2005_v29 = vsel %vm405_vm0, %v5109_v49, %v4218_v59  ;;  %v2004_v57 = vsel %vm405_vm0, %v5056_v19, %v4217_v0 }
 0x1d5   : > { %v4221_v38 = vpop.permute.xlu1 %4220  ;;  %v2054_v16 = vpack.c.bf16 %v2045_v44, %v2044_v13 }
 0x1d6   : > { %v4223_v45 = vunpack.i.h.bf16 %v4221_v38  ;;  %v4222_v8 = vunpack.i.l.bf16 %v4221_v38 }
 0x1d7   : > { %2258 = vmatprep.mubr.bf16.mxu1 %v2054_v16 }
 0x1d8   : > { %2259 = vmatmul.mubr.bf16.gmra.mxu1 %v2053_v56  ;;  %v2013_v55 = vsel %vm2008_vm11, %v2004_v57, %v4222_v8  ;;  %v2014_v6 = vsel %vm2008_vm11, %v2005_v29, %v4223_v45  ;;  %v4365_v29 = vld [vmem:[%s5720_s2 + $0xe0] sm:$0xff]  }
 0x1d9   : > { %v4226_v20 = vpop.permute.xlu1 %4225  ;;  %v4231_v14 = vpop.permute.xlu0 %4230 }
 0x1da   : > { %v4233_v48 = vunpack.i.h.bf16 %v4231_v14  ;;  %v4232_v18 = vunpack.i.l.bf16 %v4231_v14  ;;  %v4228_v26 = vunpack.i.h.bf16 %v4226_v20  ;;  %v4227_v23 = vunpack.i.l.bf16 %v4226_v20 }
 0x1dc   : > { %v2030_v63 = vsel %vm405_vm0, %v5120_v51, %v4232_v18  ;;  %v2031_v11 = vsel %vm405_vm0, %v5193_v22, %v4233_v48  ;;  %v2022_v19 = vsel %vm2017_vm12, %v2013_v55, %v4227_v23  ;;  %v2023_v34 = vsel %vm2017_vm12, %v2014_v6, %v4228_v26  ;;  %v4366_v55 = vld [vmem:[%s5720_s2 + $0xa0] sm:$0xff]  }
 0x1dd   : > { %v4246_v42 = vpop.permute.xlu1 %4245  ;;  %v4236_v9 = vpop.permute.xlu0 %4235  ;;  %v2056_v52 = vpack.c.bf16 %v2023_v34, %v2022_v19 }
 0x1de   : > { %v4238_v30 = vunpack.i.h.bf16 %v4236_v9  ;;  %v4237_v4 = vunpack.i.l.bf16 %v4236_v9  ;;  %v4248_v3 = vunpack.i.h.bf16 %v4246_v42  ;;  %v4247_v41 = vunpack.i.l.bf16 %v4246_v42 }
 0x1e0   : > { %v2039_v53 = vsel %vm2008_vm11, %v2031_v11, %v4238_v30  ;;  %v2038_v49 = vsel %vm2008_vm11, %v2030_v63, %v4237_v4  ;;  %v2007_v20 = vsel %vm405_vm0, %v5178_v27, %v4248_v3  ;;  %v2006_v14 = vsel %vm405_vm0, %v5169_v33, %v4247_v41 }
 0x1e1   : > { %v4241_v2 = vpop.permute.xlu0 %4240  ;;  %v4251_v5 = vpop.permute.xlu1 %4250  ;;  %v2061_v4 = vpack.c.bf16 %v4629_v60, %v5220_v7  ;;  %v4358_v60 = vld [vmem:[%s5720_s2 + $0xc0] sm:$0xff]   ;;  %v4364_v7 = vld [vmem:[%s5720_s2 + $0xa8] sm:$0xff]  }
 0x1e2   : > { %v4243_v58 = vunpack.i.h.bf16 %v4241_v2  ;;  %v4242_v54 = vunpack.i.l.bf16 %v4241_v2  ;;  %v4253_v31 = vunpack.i.h.bf16 %v4251_v5  ;;  %v4252_v10 = vunpack.i.l.bf16 %v4251_v5  ;;  %3987 = vmatpush3.bf16.msra.mxu0 %v4358_v60 }
 0x1e3   : > { %3988 = vmatprep.subr.bf16.mxu0 %v4359_v1 }
 0x1e4   : > { %v2046_v21 = vsel %vm2017_vm12, %v2038_v49, %v4242_v54  ;;  %v2047_v46 = vsel %vm2017_vm12, %v2039_v53, %v4243_v58  ;;  %v2015_v45 = vsel %vm2008_vm11, %v2006_v14, %v4252_v10  ;;  %v2016_v8 = vsel %vm2008_vm11, %v2007_v20, %v4253_v31  ;;  %v5358_v10 = vld [vmem:[%s5722_s4 + $0x1] ss:$0 sm:$0xff] }
 0x1e5   : > { %v4256_v47 = vpop.permute.xlu0 %4255  ;;  %v2057_v51 = vpack.c.bf16 %v2047_v46, %v2046_v21  ;;  %v4271_v22 = vpop.permute.xlu1 %4270 }
 0x1e6   : > { %v4273_v44 = vunpack.i.h.bf16 %v4271_v22  ;;  %v4272_v38 = vunpack.i.l.bf16 %v4271_v22  ;;  %v4258_v59 = vunpack.i.h.bf16 %v4256_v47  ;;  %v4257_v0 = vunpack.i.l.bf16 %v4256_v47  ;;  %v3760_v22 = vld [vmem:[%s5721_s3 + $0x1] ss:$0 sm:$0xff] }
 0x1e7   : > { %2266 = vmatprep.mubr.bf16.mxu1 %v2057_v51 }
 0x1e8   : > { %2267 = vmatmul.mubr.bf16.gmra.mxu1 %v2056_v52  ;;  %v2025_v27 = vsel %vm2017_vm12, %v2016_v8, %v4273_v44 }
 0x1e9   : > { %v4261_v32 = vpop.permute.xlu0 %4260 }
 0x1ea   : > { %v4263_v40 = vunpack.i.h.bf16 %v4261_v32  ;;  %v4262_v13 = vunpack.i.l.bf16 %v4261_v32 }
 0x1ec   : > { %v2032_v16 = vsel %vm405_vm0, %v5196_v36, %v4262_v13  ;;  %v2033_v56 = vsel %vm405_vm0, %v5227_v24, %v4263_v40  ;;  %v2024_v24 = vsel %vm2017_vm12, %v2015_v45, %v4272_v38 }
 0x1ed   : > { %v4266_v42 = vpop.permute.xlu0 %4265  ;;  %v2040_v36 = vsel %vm2008_vm11, %v2032_v16, %v4257_v0  ;;  %v2041_v18 = vsel %vm2008_vm11, %v2033_v56, %v4258_v59  ;;  %v2059_v30 = vpack.c.bf16 %v2025_v27, %v2024_v24 }
 0x1ee   : > { %v4268_v9 = vunpack.i.h.bf16 %v4266_v42  ;;  %v4267_v48 = vunpack.i.l.bf16 %v4266_v42 }
 0x1f0   : > { %v2048_v26 = vsel %vm2017_vm12, %v2040_v36, %v4267_v48  ;;  %v2049_v33 = vsel %vm2017_vm12, %v2041_v18, %v4268_v9 }
 0x1f1   : > { %v2060_v23 = vpack.c.bf16 %v2049_v33, %v2048_v26 }
 0x1f3   : > { %2274 = vmatprep.mubr.bf16.mxu1 %v2060_v23 }
 0x1f4   : > { %2275 = vmatmul.mubr.bf16.gmra.mxu1 %v2059_v30 }
 0x1f5   : > { %4077 = vmatprep.mubr.msk.bf16.mxu1 %vm405_vm0, %v2052_v15  ;;  %v4361_v15 = vld [vmem:[%s5720_s2 + $0xf0] sm:$0xff]  }
 0x1fc   : > { %4078 = vmatmul.mubr.msk.bf16.vlgmr.msra.gmra.mxu1 %vm405_vm0, %v2055_v61  ;;  %v4360_v61 = vld [vmem:[%s5720_s2 + $0xb8] sm:$0xff]  }
 0x1fd   : > { %4081 = vmatprep.mubr.msk.bf16.mxu1 %vm405_vm0, %v2058_v62  ;;  %3989 = vmatpush3.bf16.msra.mxu0 %v4360_v61 }
 0x1fe   : > { %3990 = vmatprep.subr.bf16.mxu0 %v4361_v15 }
 0x201   : > { %3991 = vmatpush3.bf16.msra.mxu0 %v4362_v12 }
 0x202   : > { %3992 = vmatprep.subr.bf16.mxu0 %v4363_v17 }
 0x204   : > { %4082 = vmatmul.mubr.msk.bf16.gmra.mxu1 %vm405_vm0, %v2061_v4 }
 0x205   : > { %3993 = vmatpush3.bf16.msra.mxu0 %v4364_v7 }
 0x206   : > { %3994 = vmatprep.subr.bf16.mxu0 %v4365_v29 }
 0x209   : > { %3995 = vmatpush3.bf16.msra.mxu0 %v4366_v55  ;;  %v5372_v55 = vcombine.high %v5366_v39, %v5366_v39 }
 0x27c   : > { %v3954_v62 = vpop.f32.mrf.mxu1 }
 0x27e   : > { %v3955_v57 = vpop.f32.mrf.mxu1 }
 0x27f   : > { %v3956_v3 = vadd.f32 %v3955_v57, %v3954_v62 }
 0x280   : > { %v3957_v6 = vpop.f32.mrf.mxu1 }
 0x282   : > { %v3958_v2 = vpop.f32.mrf.mxu1 }
 0x283   : > { %v3959_v38 = vadd.f32 %v3958_v2, %v3957_v6 }
 0x298   : > { %v3960_v63 = vpop.f32.mrf.mxu1 }
 0x29a   : > { %v3961_v11 = vpop.f32.mrf.mxu1 }
 0x29b   : > { %v3962_v51 = vadd.f32 %v3961_v11, %v3960_v63  ;;  %v3778_v11 = vrot.slane %v5366_v39, 9 }
 0x29c   : > { %v3963_v58 = vpop.f32.mrf.mxu1 }
 0x29e   : > { %v3964_v54 = vpop.f32.mrf.mxu1 }
 0x29f   : > { %v3965_v31 = vadd.f32 %v3964_v54, %v3963_v58 }
 0x2a8   : > { %v3966_v5 = vpop.f32.mrf.mxu1 }
 0x2aa   : > { %v3967_v53 = vpop.f32.mrf.mxu1 }
 0x2ab   : > { %v3968_v45 = vadd.f32 %v3967_v53, %v3966_v5 }
 0x2ac   : > { %v3969_v49 = vpop.f32.mrf.mxu1 }
 0x2ae   : > { %v3970_v19 = vpop.f32.mrf.mxu1 }
 0x2af   : > { %v3971_v15 = vadd.f32 %v3970_v19, %v3969_v49 }
 0x2b4   : > { %v3972_v34 = vpop.f32.mrf.mxu1 }
 0x2b6   : > { %v3973_v21 = vpop.f32.mrf.mxu1 }
 0x2b7   : > { %v3974_v59 = vadd.f32 %v3973_v21, %v3972_v34 }
 0x2b8   : > { %v3975_v46 = vpop.f32.mrf.mxu1 }
 0x2ba   : > { %v3976_v47 = vpop.f32.mrf.mxu1 }
 0x2bb   : > { %v3977_v4 = vadd.f32 %v3976_v47, %v3975_v46 }
 0x2bc   : > { %v4079_v52 = vpop.f32.mrf.mxu1 }
 0x2bd   : > { %v2326_v41 = vadd.f32 %v4079_v52, %v3962_v51 }
 0x2be   : > { %v2317_v32 = vpop.f32.mrf.mxu1 }
 0x2bf   : > { %v2356_v40 = vmul.f32 %v3760_v22, %v2326_v41  ;;  %v2318_v13 = vadd.f32 %v3956_v3, %v2317_v32 }
 0x2c0   : > { %v4080_v44 = vpop.f32.mrf.mxu1 }
 0x2c1   : > { %v2354_v16 = vmul.f32 %v3760_v22, %v2318_v13  ;;  %v2329_v56 = vadd.f32 %v4080_v44, %v3965_v31  ;;  %v2368_v20 = vadd.f32 %v5358_v10, %v2356_v40 }
 0x2c2   : > { %v2320_v14 = vpop.f32.mrf.mxu1 }
 0x2c3   : > { %v2357_v0 = vmul.f32 %v3760_v22, %v2329_v56  ;;  %v2321_v42 = vadd.f32 %v3959_v38, %v2320_v14  ;;  %v2366_v9 = vadd.f32 %v5358_v10, %v2354_v16  ;;  %v2376_v24 = vmax.f32 %v2368_v20, 0.0 }
 0x2c4   : > { %v4083_v8 = vpop.f32.mrf.mxu1 }
 0x2c5   : > { %v2369_v48 = vadd.f32 %v5358_v10, %v2357_v0  ;;  %v2355_v36 = vmul.f32 %v3760_v22, %v2321_v42  ;;  %v2342_v18 = vadd.f32 %v4083_v8, %v3974_v59  ;;  %v2374_v28 = vmax.f32 %v2366_v9, 0.0 }
 0x2c6   : > { %v2333_v27 = vpop.f32.mrf.mxu1 }
 0x2c7   : > { %v2377_v26 = vmax.f32 %v2369_v48, 0.0  ;;  %v2367_v33 = vadd.f32 %v5358_v10, %v2355_v36  ;;  %v2360_v23 = vmul.f32 %v3760_v22, %v2342_v18  ;;  %v2334_v30 = vadd.f32 %v3968_v45, %v2333_v27 }
 0x2c8   : > { %v4084_v50 = vpop.f32.mrf.mxu1 }
 0x2c9   : > { %v2383_v60 = vmax.f32 %v2376_v24, %v2377_v26  ;;  %v2375_v1 = vmax.f32 %v2367_v33, 0.0  ;;  %v2372_v61 = vadd.f32 %v5358_v10, %v2360_v23  ;;  %v2358_v12 = vmul.f32 %v3760_v22, %v2334_v30 }
 0x2ca   : > { %v2345_v17 = vadd.f32 %v4084_v50, %v3977_v4  ;;  %v2336_v62 = vpop.f32.mrf.mxu1 }
 0x2cb   : > { %v2407_v7 = vcombine.high %v2383_v60, %v2383_v60  ;;  %v2414_v29 = vrot.slane %v2383_v60, %v4615_v37  ;;  %v2382_v57 = vmax.f32 %v2374_v28, %v2375_v1  ;;  %v2380_v6 = vmax.f32 %v2372_v61, 0.0 }
 0x2cc   : > { %v2361_v2 = vmul.f32 %v3760_v22, %v2345_v17  ;;  %v2337_v63 = vadd.f32 %v3971_v15, %v2336_v62  ;;  %v2370_v19 = vadd.f32 %v5358_v10, %v2358_v12 }
 0x2cd   : > { %v2421_v58 = vrot.slane %v2407_v7, %v4615_v37  ;;  %v2422_v54 = vcombine.high %v2414_v29, %v2414_v29  ;;  %v3766_v5 = vrot.slane %v2414_v29, 9  ;;  %v2390_v53 = vcombine.high %v2382_v57, %v2382_v57 }
 0x2ce   : > { %v2397_v49 = vrot.slane %v2382_v57, %v4615_v37  ;;  %v2373_v34 = vadd.f32 %v5358_v10, %v2361_v2  ;;  %v2359_v21 = vmul.f32 %v3760_v22, %v2337_v63  ;;  %v2378_v15 = vmax.f32 %v2370_v19, 0.0 }
 0x2cf   : > { %v2423_v46 = vcombine.high %v2421_v58, %v2421_v58  ;;  %v3767_v47 = vrot.slane %v2422_v54, 9  ;;  %v3768_v51 = vrot.slane %v2421_v58, 9  ;;  %v2526_v52 = vmax.f32 %v2414_v29, %v3766_v5 }
 0x2d0   : > { %v2404_v3 = vrot.slane %v2390_v53, %v4615_v37  ;;  %v2405_v41 = vcombine.high %v2397_v49, %v2397_v49  ;;  %v3762_v32 = vrot.slane %v2397_v49, 9  ;;  %v2381_v31 = vmax.f32 %v2373_v34, 0.0 }
 0x2d1   : > { %v3769_v40 = vrot.slane %v2423_v46, 9  ;;  %v2527_v13 = vmax.f32 %v2422_v54, %v3767_v47  ;;  %v2528_v44 = vmax.f32 %v2421_v58, %v3768_v51  ;;  %v2573_v38 = vrot.slane %v2526_v52, %v4619_v43 }
 0x2d2   : > { %v2406_v16 = vcombine.high %v2404_v3, %v2404_v3  ;;  %v3763_v56 = vrot.slane %v2405_v41, 9  ;;  %v3764_v20 = vrot.slane %v2404_v3, 9  ;;  %v2522_v14 = vmax.f32 %v2397_v49, %v3762_v32 }
 0x2d3   : > { %v2529_v59 = vmax.f32 %v2423_v46, %v3769_v40  ;;  %v2577_v22 = vrot.slane %v2527_v13, %v4619_v43  ;;  %v2581_v0 = vrot.slane %v2528_v44, %v4619_v43  ;;  %v2385_v42 = vmax.f32 %v2380_v6, %v2381_v31 }
 0x2d4   : > { %v3765_v45 = vrot.slane %v2406_v16, 9  ;;  %v2523_v8 = vmax.f32 %v2405_v41, %v3763_v56  ;;  %v2524_v9 = vmax.f32 %v2404_v3, %v3764_v20  ;;  %v2557_v48 = vrot.slane %v2522_v14, %v4619_v43 }
 0x2d5   : > { %v2585_v36 = vrot.slane %v2529_v59, %v4619_v43  ;;  %v2441_v18 = vcombine.high %v2385_v42, %v2385_v42  ;;  %v2448_v24 = vrot.slane %v2385_v42, %v4615_v37  ;;  %v2371_v27 = vadd.f32 %v5358_v10, %v2359_v21 }
 0x2d6   : > { %v2525_v26 = vmax.f32 %v2406_v16, %v3765_v45  ;;  %v2561_v33 = vrot.slane %v2523_v8, %v4619_v43  ;;  %v2565_v23 = vrot.slane %v2524_v9, %v4619_v43  ;;  %v2621_v30 = vsel %vm1665_vm4, %v2577_v22, %v2573_v38 }
 0x2d7   : > { %v2455_v4 = vrot.slane %v2441_v18, %v4615_v37  ;;  %v2456_v50 = vcombine.high %v2448_v24, %v2448_v24  ;;  %v3774_v28 = vrot.slane %v2448_v24, 9  ;;  %v2379_v60 = vmax.f32 %v2371_v27, 0.0 }
 0x2d8   : > { %v2569_v1 = vrot.slane %v2525_v26, %v4619_v43  ;;  %v2618_v61 = vsel %vm1665_vm4, %v2561_v33, %v2557_v48  ;;  %v2622_v12 = vsel %vm1667_vm5, %v2581_v0, %v2621_v30  ;;  %v2661_v45 = vrot.slane %v5372_v55, 5  ;;  %v4368_v30 = vld [vmem:[%s5720_s2 + $0x98] sm:$0xff]  }
 0x2d9   : > { %v2619_v10 = vsel %vm1667_vm5, %v2565_v23, %v2618_v61  ;;  %v2457_v17 = vcombine.high %v2455_v4, %v2455_v4  ;;  %v3775_v62 = vrot.slane %v2456_v50, 9  ;;  %v3776_v7 = vrot.slane %v2455_v4, 9  ;;  %v4367_v23 = vld [vmem:[%s5720_s2 + $0xd8] sm:$0xff]  }
 0x2da   : > { %v2534_v29 = vmax.f32 %v2448_v24, %v3774_v28  ;;  %v2384_v57 = vmax.f32 %v2378_v15, %v2379_v60  ;;  %v2623_v6 = vsel %vm1669_vm6, %v2585_v36, %v2622_v12  ;;  %v2620_v2 = vsel %vm1669_vm6, %v2569_v1, %v2619_v10  ;;  %3996 = vmatprep.subr.bf16.mxu0 %v4367_v23 }
 0x2db   : > { %v3777_v63 = vrot.slane %v2457_v17, 9  ;;  %v2535_v58 = vmax.f32 %v2456_v50, %v3775_v62  ;;  %v2536_v54 = vmax.f32 %v2455_v4, %v3776_v7  ;;  %v2631_v5 = vrot.slane %v2623_v6, 7  ;;  %3997 = vmatpush3.bf16.msra.mxu0 %v4368_v30 }
 0x2dc   : > { %v2605_v53 = vrot.slane %v2534_v29, %v4619_v43  ;;  %v2424_v49 = vcombine.high %v2384_v57, %v2384_v57  ;;  %v2431_v19 = vrot.slane %v2384_v57, %v4615_v37  ;;  %v2630_v34 = vrot.slane %v2620_v2, 7 }
 0x2dd   : > { %v2537_v21 = vmax.f32 %v2457_v17, %v3777_v63  ;;  %v2609_v46 = vrot.slane %v2535_v58, %v4619_v43  ;;  %v2613_v47 = vrot.slane %v2536_v54, %v4619_v43  ;;  %v2639_v51 = vsel %vm1747_vm1, 0.0, %v2631_v5 }
 0x2de   : > { %v2438_v52 = vrot.slane %v2424_v49, %v4615_v37  ;;  %v2439_v3 = vcombine.high %v2431_v19, %v2431_v19  ;;  %v3770_v41 = vrot.slane %v2431_v19, 9  ;;  %v5404_v32 = vsel %vm2642_vm13, %v2639_v51, 0.0 }
 0x2df   : > { %v2617_v31 = vrot.slane %v2537_v21, %v4619_v43  ;;  %v2627_v40 = vsel %vm1665_vm4, %v2609_v46, %v2605_v53  ;;  %v2638_v13 = vsel %vm1747_vm1, 0.0, %v2630_v34  ;;  %v2654_v44 = vcombine.high %v5404_v32, %v5404_v32 }
 0x2e0   : > { %v2440_v38 = vcombine.high %v2438_v52, %v2438_v52  ;;  %v3771_v16 = vrot.slane %v2439_v3, 9  ;;  %v3772_v56 = vrot.slane %v2438_v52, 9  ;;  %v2530_v20 = vmax.f32 %v2431_v19, %v3770_v41 }
 0x2e1   : > { %v2628_v14 = vsel %vm1667_vm5, %v2613_v47, %v2627_v40  ;;  %v5413_v59 = vsel %vm2642_vm13, %v2638_v13, 0.0  ;;  %v2669_v36 = vrot.slane %v2654_v44, 5  ;;  %v3780_v28 = vrot.slane %v5404_v32, 9 }
 0x2e2   : > { %v3773_v22 = vrot.slane %v2440_v38, 9  ;;  %v2531_v0 = vmax.f32 %v2439_v3, %v3771_v16  ;;  %v2532_v42 = vmax.f32 %v2438_v52, %v3772_v56  ;;  %v2589_v8 = vrot.slane %v2530_v20, %v4619_v43 }
 0x2e3   : > { %v2629_v9 = vsel %vm1669_vm6, %v2617_v31, %v2628_v14  ;;  %v2653_v48 = vcombine.high %v5413_v59, %v5413_v59  ;;  %v3779_v4 = vrot.slane %v5413_v59, 9  ;;  %v3782_v60 = vrot.slane %v5366_v39, 10  ;;  %v4369_v14 = vld [vmem:[%s5720_s2 + $0xd0] sm:$0xff]  }
 0x2e4   : > { %v2533_v18 = vmax.f32 %v2440_v38, %v3773_v22  ;;  %v2593_v24 = vrot.slane %v2531_v0, %v4619_v43  ;;  %v2597_v27 = vrot.slane %v2532_v42, %v4619_v43  ;;  %v2633_v26 = vrot.slane %v2629_v9, 7  ;;  %v4370_v22 = vld [vmem:[%s5720_s2 + $0x90] sm:$0xff]   ;;  %3998 = vmatprep.subr.bf16.mxu0 %v4369_v14 }
 0x2e5   : > { %v2665_v50 = vrot.slane %v2653_v48, 5  ;;  %v2680_v12 = vrot.slane %v5372_v55, 6  ;;  %v5449_v7 = vsel %vm5424_vm8, %v3780_v28, %v2669_v36  ;;  %v2684_v55 = vrot.slane %v2653_v48, 6  ;;  %3999 = vmatpush3.bf16.msra.mxu0 %v4370_v22  ;;  %v4377_v14 = vld [vmem:[%s5720_s2 + $0x190] sm:$0xff]  }
 0x2e6   : > { %v2601_v1 = vrot.slane %v2533_v18, %v4619_v43  ;;  %v2624_v61 = vsel %vm1665_vm4, %v2593_v24, %v2589_v8  ;;  %v2641_v15 = vsel %vm1747_vm1, 0.0, %v2633_v26  ;;  %v2688_v2 = vrot.slane %v2654_v44, 6  ;;  %4085 = vmatprep.subr.bf16.mxu0 %v4456_v25  ;;  %v4378_v22 = vld [vmem:[%s5720_s2 + $0x150] sm:$0xff]  }
 0x2e7   : > { %v2625_v10 = vsel %vm1667_vm5, %v2597_v27, %v2624_v61  ;;  %v2647_v17 = vsel %vm2642_vm13, %v2641_v15, 0.0  ;;  %v5445_v62 = vsel %vm5424_vm8, %v3779_v4, %v2665_v50  ;;  %v2662_v58 = vsel %vm5424_vm8, %v3778_v11, %v2661_v45 }
 0x2e8   : > { %v2626_v29 = vsel %vm1669_vm6, %v2601_v1, %v2625_v10  ;;  %v2732_v57 = vcombine.low %v5445_v62, %v5449_v7  ;;  %v2695_v63 = vcombine.high %v2647_v17, %v2647_v17  ;;  %v3783_v5 = vrot.slane %v5413_v59, 10 }
 0x2e9   : > { %v2632_v6 = vrot.slane %v2626_v29, 7  ;;  %v3784_v49 = vrot.slane %v5404_v32, 10  ;;  %v2681_v34 = vsel %vm5460_vm10, %v3782_v60, %v2680_v12  ;;  %v2744_v11 = vcombine.low %v2647_v17, %v5366_v39 }
 0x2ea   : > { %v2702_v19 = vrot.slane %v2695_v63, 6  ;;  %v2685_v46 = vsel %vm5460_vm10, %v3783_v5, %v2684_v55  ;;  %v3787_v47 = vrot.slane %v2647_v17, 10  ;;  %v2698_v41 = vrot.slane %v2695_v63, 5 }
 0x2eb   : > { %v2640_v53 = vsel %vm1747_vm1, 0.0, %v2632_v6  ;;  %v2689_v3 = vsel %vm5460_vm10, %v3784_v49, %v2688_v2  ;;  %v3786_v44 = vrot.slane %v2647_v17, 9  ;;  %v2708_v0 = vcombine.low %v2662_v58, %v5445_v62 }
 0x2ec   : > { %v2646_v21 = vsel %vm2642_vm13, %v2640_v53, 0.0  ;;  %v2703_v13 = vsel %vm5460_vm10, %v3787_v47, %v2702_v19  ;;  %v2736_v42 = vcombine.low %v2685_v46, %v2689_v3  ;;  %v2716_v30 = vcombine.low %v2681_v34, %v2685_v46  ;;  %vm3117_vm13 = vmor %vm1747_vm1, %vm1667_vm5 }
 0x2ed   : > { %v5474_v51 = vcombine.low %v5404_v32, %v2646_v21  ;;  %v2655_v52 = vcombine.high %v2646_v21, %v2646_v21  ;;  %v3781_v31 = vrot.slane %v2646_v21, 9  ;;  %v3785_v40 = vrot.slane %v2646_v21, 10  ;;  %vm3118_vm15 = vmor %vm3117_vm13, %vm1671_vm7 }
 0x2ee   : > { %v2758_v20 = vcombine.low %v2703_v13, %v2681_v34  ;;  %v2699_v9 = vsel %vm5424_vm8, %v3786_v44, %v2698_v41  ;;  %v2725_v28 = vcombine.low %v2646_v21, %v2647_v17  ;;  %v2724_v60 = vcombine.low %v5413_v59, %v5404_v32  ;;  %vm5606_vm5 = vmor %vm3118_vm15, %vm1675_vm9 }
 0x2ef   : > { %v4274_v38 = vpack.i.bf16 %v2744_v11, %v5474_v51  ;;  %v2673_v16 = vrot.slane %v2655_v52, 5  ;;  %v2692_v56 = vrot.slane %v2655_v52, 6  ;;  %v2751_v4 = vcombine.low %v2699_v9, %v2662_v58 }
 0x2f0   : > { %v4299_v1 = vpack.i.bf16 %v2725_v28, %v2724_v60  ;;  %v2704_v62 = vcombine.low %v5366_v39, %v5413_v59  ;;  %vm4460_vm6 = vmmov 0  }
 0x2f1   : > { %4275 = vrot.lane.b32.xlu0 %v4274_v38, %s4457_s22  ;;  %v2674_v45 = vsel %vm5424_vm8, %v3781_v31, %v2673_v16  ;;  %v2693_v8 = vsel %vm5460_vm10, %v3785_v40, %v2692_v56  ;;  %v4373_v38 = vld [vmem:[%s5720_s2 + $0x1a8] sm:$0xff]   ;;  %v4374_v16 = vld [vmem:[%s5720_s2 + $0x1a0] sm:$0xff]   ;;  %v4375_v56 = vld [vmem:[%s5720_s2 + $0x198] sm:$0xff]  }
 0x2f2   : > { %v2709_v48 = vcombine.low %v5449_v7, %v2674_v45  ;;  %v2737_v36 = vcombine.low %v2693_v8, %v2703_v13  ;;  %v2717_v18 = vcombine.low %v2689_v3, %v2693_v8  ;;  %v2733_v24 = vcombine.low %v2674_v45, %v2699_v9  ;;  %v4371_v13 = vld [vmem:[%s5720_s2 + $0x118] sm:$0xff]   ;;  %4009 = vmatprep.subr.bf16.mxu1 %v4375_v56  ;;  %v4381_v45 = vld [vmem:[%s5720_s2 + $0x180] sm:$0xff]  }
 0x2f3   : > { %v4382_v8 = vld [vmem:[%s5720_s2 + $0x140] sm:$0xff]   ;;  %v4383_v9 = vld [vmem:[%s5720_s2 + $0x178] sm:$0xff]  }
 0x2f4   : > { %v4284_v27 = vpack.i.bf16 %v2709_v48, %v2708_v0  ;;  %v4279_v26 = vpack.i.bf16 %v2737_v36, %v2736_v42  ;;  %v2775_v23 = vpack.c.bf16 %v2758_v20, %v2717_v18  ;;  %v4289_v33 = vpack.i.bf16 %v2717_v18, %v2716_v30  ;;  %v4376_v20 = vld [vmem:[%s5720_s2 + $0x158] sm:$0xff]   ;;  %v4379_v0 = vld [vmem:[%s5720_s2 + $0x188] sm:$0xff]   ;;  %v3843_v30 = vld [vmem:[%s5721_s3 + $0x2] ss:$0 sm:$0xff] }
 0x2f5   : > { %v4294_v50 = vpack.i.bf16 %v2751_v4, %v2709_v48  ;;  %4010 = vmatpush3.bf16.msra.mxu1 %v4376_v20  ;;  %v4380_v42 = vld [vmem:[%s5720_s2 + $0x148] sm:$0xff]   ;;  %v4384_v48 = vld [vmem:[%s5720_s2 + $0x138] sm:$0xff]  }
 0x2f6   : > { %4285 = vrot.lane.b32.xlu1 %v4284_v27, %s4458_s23  ;;  %4280 = vrot.lane.b32.xlu0 %v4279_v26, %s4458_s23 }
 0x2f7   : > { %4011 = vmatprep.subr.bf16.mxu1 %v4377_v14 }
 0x2f9   : > { %4012 = vmatpush3.bf16.msra.mxu1 %v4378_v22 }
 0x2fa   : > { %4290 = vrot.lane.b32.xlu1 %v4289_v33, %s4457_s22  ;;  %4295 = vrot.lane.b32.xlu0 %v4294_v50, %s4459_s29  ;;  %v3844_v33 = vld [vmem:[%s5722_s4 + $0x2] ss:$0 sm:$0xff] }
 0x2fb   : > { %4013 = vmatprep.subr.bf16.mxu1 %v4379_v0 }
 0x2fd   : > { %4014 = vmatpush3.bf16.msra.mxu1 %v4380_v42 }
 0x2fe   : > { %4300 = vrot.lane.b32.xlu1 %v4299_v1, %s4459_s29  ;;  %4015 = vmatprep.subr.bf16.mxu1 %v4381_v45  ;;  %v4387_v45 = vld [vmem:[%s5720_s2 + $0x168] sm:$0xff]  }
 0x301   : > { %4016 = vmatpush3.bf16.msra.mxu1 %v4382_v8  ;;  %v4388_v8 = vld [vmem:[%s5720_s2 + $0x128] sm:$0xff]  }
 0x302   : > { %4017 = vmatprep.subr.bf16.mxu1 %v4383_v9 }
 0x305   : > { %4018 = vmatpush3.bf16.msra.mxu1 %v4384_v48 }
 0x363   : > { %v4276_v61 = vpop.permute.xlu0 %4275 }
 0x364   : > { %v4278_v6 = vunpack.i.h.bf16 %v4276_v61  ;;  %v4277_v2 = vunpack.i.l.bf16 %v4276_v61 }
 0x368   : > { %v4286_v15 = vpop.permute.xlu1 %4285  ;;  %v4281_v12 = vpop.permute.xlu0 %4280 }
 0x369   : > { %v4283_v10 = vunpack.i.h.bf16 %v4281_v12  ;;  %v4282_v29 = vunpack.i.l.bf16 %v4281_v12  ;;  %v4288_v32 = vunpack.i.h.bf16 %v4286_v15  ;;  %v4287_v54 = vunpack.i.l.bf16 %v4286_v15 }
 0x36b   : > { %v2767_v17 = vsel %vm405_vm0, %v2732_v57, %v4282_v29  ;;  %v2768_v55 = vsel %vm405_vm0, %v2733_v24, %v4283_v10  ;;  %v2762_v47 = vsel %vm405_vm0, %v5474_v51, %v4288_v32  ;;  %v2761_v52 = vsel %vm405_vm0, %v2704_v62, %v4287_v54  ;;  %v4372_v51 = vld [vmem:[%s5720_s2 + $0x110] sm:$0xff]  }
 0x36c   : > { %v4291_v63 = vpop.permute.xlu1 %4290  ;;  %v4296_v58 = vpop.permute.xlu0 %4295  ;;  %v2769_v34 = vsel %vm2008_vm11, %v2767_v17, %v4277_v2  ;;  %v2770_v21 = vsel %vm2008_vm11, %v2768_v55, %v4278_v6 }
 0x36d   : > { %v4298_v5 = vunpack.i.h.bf16 %v4296_v58  ;;  %v4297_v53 = vunpack.i.l.bf16 %v4296_v58  ;;  %v4293_v49 = vunpack.i.h.bf16 %v4291_v63  ;;  %v4292_v19 = vunpack.i.l.bf16 %v4291_v63 }
 0x36f   : > { %v2771_v7 = vsel %vm2017_vm12, %v2769_v34, %v4297_v53  ;;  %v2772_v57 = vsel %vm2017_vm12, %v2770_v21, %v4298_v5  ;;  %v2763_v31 = vsel %vm2008_vm11, %v2761_v52, %v4292_v19  ;;  %v2764_v40 = vsel %vm2008_vm11, %v2762_v47, %v4293_v49 }
 0x370   : > { %v4301_v11 = vpop.permute.xlu1 %4300  ;;  %v2774_v46 = vpack.c.bf16 %v2772_v57, %v2771_v7  ;;  %v5582_v53 = vsel %vm2656_vm14, %v4612_v35, 0.0 }
 0x371   : > { %v4303_v3 = vunpack.i.h.bf16 %v4301_v11  ;;  %v4302_v41 = vunpack.i.l.bf16 %v4301_v11  ;;  %v3107_v57 = vrot.slane %v5582_v53, %v4615_v37 }
 0x372   : > { %2956 = vmatprep.mubr.bf16.mxu0 %v2774_v46 }
 0x373   : > { %v2766_v39 = vsel %vm2017_vm12, %v2764_v40, %v4303_v3  ;;  %v2765_v59 = vsel %vm2017_vm12, %v2763_v31, %v4302_v41  ;;  %v3108_v41 = vcombine.high %v3107_v57, %v3107_v57 }
 0x374   : > { %v2773_v44 = vpack.c.bf16 %v2766_v39, %v2765_v59  ;;  %v4385_v59 = vld [vmem:[%s5720_s2 + $0x170] sm:$0xff]  }
 0x375   : > { %v3122_v56 = vrot.slane %v3108_v41, 7  ;;  %4019 = vmatprep.subr.bf16.mxu1 %v4385_v59 }
 0x376   : > { %2957 = vmatmul.mubr.bf16.vlgmr.msra.gmra.mxu0 %v2773_v44 }
 0x377   : > { %4086 = vmatpush3.bf16.msra.mxu0 %v4371_v13  ;;  %4089 = vmatprep.mubr.msk.bf16.mxu0 %vm4460_vm6, %v4456_v25  ;;  %v4386_v13 = vld [vmem:[%s5720_s2 + $0x130] sm:$0xff]  }
 0x378   : > { %4087 = vmatprep.subr.bf16.mxu0 %v4456_v25  ;;  %4020 = vmatpush3.bf16.msra.mxu1 %v4386_v13 }
 0x379   : > { %4021 = vmatprep.subr.bf16.mxu1 %v4387_v45 }
 0x37b   : > { %4088 = vmatpush3.bf16.msra.mxu0 %v4372_v51 }
 0x37c   : > { %4093 = vmatprep.subr.bf16.mxu0 %v4456_v25  ;;  %4022 = vmatpush3.bf16.msra.mxu1 %v4388_v8 }
 0x37e   : > { %4090 = vmatmul.mubr.msk.bf16.vlgmr.msra.gmra.mxu0 %vm405_vm0, %v2775_v23 }
 0x37f   : > { %4097 = vmatprep.mubr.msk.bf16.mxu0 %vm4460_vm6, %v4456_v25  ;;  %4094 = vmatpush3.bf16.msra.mxu0 %v4373_v38 }
 0x380   : > { %4095 = vmatprep.subr.bf16.mxu0 %v4456_v25 }
 0x383   : > { %4096 = vmatpush3.bf16.msra.mxu0 %v4374_v16  ;;  %v3849_v16 = vrot.slane %v3107_v57, 9 }
 0x384   : > { %4101 = vmatprep.subr.bf16.mxu0 %v4456_v25 }
 0x385   : > { %v3123_v48 = vsel %vm5606_vm5, %v3849_v16, %v3122_v56 }
 0x436   : > { %v4000_v36 = vpop.f32.mrf.mxu0 }
 0x438   : > { %v4001_v18 = vpop.f32.mrf.mxu0 }
 0x439   : > { %v4002_v26 = vadd.f32 %v4001_v18, %v4000_v36 }
 0x43a   : > { %v4003_v24 = vpop.f32.mrf.mxu0 }
 0x43c   : > { %v4004_v27 = vpop.f32.mrf.mxu0 }
 0x43d   : > { %v4005_v28 = vadd.f32 %v4004_v27, %v4003_v24 }
 0x43e   : > { %v2999_v23 = vpop.f32.mrf.mxu0 }
 0x43f   : > { %v3000_v4 = vadd.f32 %v4002_v26, %v2999_v23 }
 0x440   : > { %v4091_v50 = vpop.f32.mrf.mxu0 }
 0x441   : > { %v3012_v60 = vmul.f32 %v3843_v30, %v3000_v4 }
 0x442   : > { %v3002_v1 = vpop.f32.mrf.mxu0 }
 0x443   : > { %v3018_v61 = vadd.f32 %v3844_v33, %v3012_v60  ;;  %v3003_v15 = vadd.f32 %v4005_v28, %v3002_v1 }
 0x444   : > { %v4092_v12 = vpop.f32.mrf.mxu0 }
 0x445   : > { %v3020_v10 = vmax.f32 %v3018_v61, 0.0  ;;  %v3013_v29 = vmul.f32 %v3843_v30, %v3003_v15  ;;  %v4389_v15 = vld [vmem:[%s5720_s2 + $0x160] sm:$0xff]  }
 0x446   : > { %v4390_v12 = vld [vmem:[%s5720_s2 + $0x120] sm:$0xff]   ;;  %4023 = vmatprep.subr.bf16.mxu1 %v4389_v15 }
 0x447   : > { %v3024_v17 = vcombine.high %v3020_v10, %v3020_v10  ;;  %v3019_v55 = vadd.f32 %v3844_v33, %v3013_v29  ;;  %4024 = vmatpush3.bf16.msra.mxu1 %v4390_v12 }
 0x449   : > { %v3028_v6 = vmax.f32 %v3020_v10, %v3024_v17  ;;  %v3021_v2 = vmax.f32 %v3019_v55, 0.0 }
 0x44b   : > { %v3038_v63 = vrot.slane %v3028_v6, %v4615_v37  ;;  %v3025_v58 = vcombine.high %v3021_v2, %v3021_v2 }
 0x44d   : > { %v3039_v32 = vcombine.high %v3038_v63, %v3038_v63  ;;  %v3845_v54 = vrot.slane %v3038_v63, 9  ;;  %v3029_v5 = vmax.f32 %v3021_v2, %v3025_v58 }
 0x44f   : > { %v3846_v49 = vrot.slane %v3039_v32, 9  ;;  %v3064_v19 = vmax.f32 %v3038_v63, %v3845_v54  ;;  %v3046_v34 = vrot.slane %v3029_v5, %v4615_v37 }
 0x451   : > { %v3065_v21 = vmax.f32 %v3039_v32, %v3846_v49  ;;  %v3047_v62 = vcombine.high %v3046_v34, %v3046_v34  ;;  %v3847_v7 = vrot.slane %v3046_v34, 9  ;;  %v3075_v11 = vrot.slane %v3064_v19, %v4619_v43 }
 0x453   : > { %v3079_v46 = vrot.slane %v3065_v21, %v4619_v43  ;;  %v3848_v47 = vrot.slane %v3047_v62, 9  ;;  %v3066_v52 = vmax.f32 %v3046_v34, %v3847_v7 }
 0x455   : > { %v3067_v35 = vmax.f32 %v3047_v62, %v3848_v47  ;;  %v3088_v3 = vsel %vm1665_vm4, %v3079_v46, %v3075_v11  ;;  %v3083_v40 = vrot.slane %v3066_v52, %v4619_v43 }
 0x456   : > { %v3090_v31 = vrot.slane %v3088_v3, 7 }
 0x457   : > { %v3087_v39 = vrot.slane %v3067_v35, %v4619_v43 }
 0x458   : > { %v3094_v44 = vsel %vm1747_vm1, 0.0, %v3090_v31 }
 0x459   : > { %v3089_v51 = vsel %vm1665_vm4, %v3087_v39, %v3083_v40  ;;  %v3097_v38 = vsel %vm2656_vm14, %v3094_v44, 0.0 }
 0x45a   : > { %v3091_v43 = vrot.slane %v3089_v51, 7  ;;  %v3115_v20 = vrot.slane %v3097_v38, %v4615_v37  ;;  %v3141_v19 = vcombine.low %v5582_v53, %v3097_v38 }
 0x45c   : > { %v3095_v22 = vsel %vm1747_vm1, 0.0, %v3091_v43  ;;  %v3852_v0 = vcombine.high %v3107_v57, %v3115_v20  ;;  %v3116_v42 = vcombine.high %v3115_v20, %v3115_v20  ;;  %v3850_v24 = vrot.slane %v3115_v20, 9  ;;  %v4391_v43 = vld [vmem:[%s5723_s5 + $0x8] sm:$0xff]  }
 0x45d   : > { %v3098_v9 = vsel %vm2656_vm14, %v3095_v22, 0.0  ;;  %vm3562_vm1 = vcmask 73728  }
 0x45e   : > { %v3135_v36 = vrot.slane %v3098_v9, %v4615_v37  ;;  %v3203_v18 = vcombine.low %v3098_v9, %v5582_v53  ;;  %v3126_v27 = vrot.slane %v3116_v42, 7  ;;  %v3168_v26 = vrot.slane %v3852_v0, %v4615_v37  ;;  %v3910_v42 = vld [vmem:[%s5721_s3 + $0x3] ss:$0 sm:$0xff] }
 0x45f   : > { %v3172_v6 = vcombine.low %v3097_v38, %v3098_v9  ;;  %v3911_v9 = vld [vmem:[%s5722_s4 + $0x3] ss:$0 sm:$0xff] }
 0x460   : > { %v3210_v23 = vrot.slane %v3203_v18, %v4615_v37  ;;  %v3854_v30 = vcombine.high %v3135_v36, %v3107_v57  ;;  %v3127_v4 = vsel %vm5606_vm5, %v3850_v24, %v3126_v27  ;;  %v3853_v33 = vcombine.high %v3115_v20, %v3135_v36  ;;  %v4392_v20 = vld [vmem:[%s5723_s5] sm:$0xff]  }
 0x461   : > { %v3150_v50 = vcombine.low %v3123_v48, %v3127_v4  ;;  %v3136_v28 = vcombine.high %v3135_v36, %v3135_v36  ;;  %v3851_v29 = vrot.slane %v3135_v36, 9  ;;  %v3179_v54 = vrot.slane %v3172_v6, %v4615_v37 }
 0x462   : > { %v4309_v60 = vpack.i.bf16 %v3168_v26, %v3210_v23  ;;  %v3232_v1 = vrot.slane %v3854_v30, %v4615_v37  ;;  %v3199_v61 = vrot.slane %v3853_v33, %v4615_v37  ;;  %v3148_v57 = vrot.slane %v3141_v19, %v4615_v37  ;;  %v3506_v33 = vld [vmem:[%s5724_s6] sm:$0x1] }
 0x463   : > { %v3157_v10 = vrot.slane %v3150_v50, %v4615_v37  ;;  %v3139_v17 = vrot.slane %v3136_v28, 7 }
 0x464   : > { %4310 = vrot.lane.b32.xlu1 %v4309_v60, %s4457_s22  ;;  %v3242_v55 = vpack.c.bf16 %v3232_v1, %v3232_v1 }
 0x465   : > { %v4304_v2 = vpack.i.bf16 %v3157_v10, %v3199_v61  ;;  %v3140_v63 = vsel %vm5606_vm5, %v3851_v29, %v3139_v17 }
 0x466   : > { %4098 = vmatmul.mubr.msk.bf16.vlgmr.msra.gmra.mxu0 %vm405_vm0, %v3242_v55  ;;  %v3214_v58 = vcombine.low %v3140_v63, %v3123_v48  ;;  %v3183_v32 = vcombine.low %v3127_v4, %v3140_v63 }
 0x467   : > { %4305 = vrot.lane.b32.xlu0 %v4304_v2, %s4458_s23  ;;  %4105 = vmatprep.mubr.msk.bf16.mxu0 %vm4460_vm6, %v4456_v25 }
 0x468   : > { %v3221_v5 = vrot.slane %v3214_v58, %v4615_v37  ;;  %v3190_v11 = vrot.slane %v3183_v32, %v4615_v37  ;;  %4102 = vmatpush3.bf16.msra.mxu0 %v4391_v43 }
 0x469   : > { %4103 = vmatprep.subr.bf16.mxu0 %v4456_v25 }
 0x46a   : > { %v4314_v49 = vpack.i.bf16 %v3179_v54, %v3221_v5 }
 0x46c   : > { %4315 = vrot.lane.b32.xlu0 %v4314_v49, %s4459_s29  ;;  %4104 = vmatpush3.bf16.msra.mxu0 %v4392_v20  ;;  %s5677_s29 = scalar_lea.hbm %s5725_s7, %s3916_s9 }
 0x4d6   : > { %v4311_v7 = vpop.permute.xlu1 %4310 }
 0x4d7   : > { %v4313_v52 = vunpack.i.h.bf16 %v4311_v7  ;;  %v4312_v35 = vunpack.i.l.bf16 %v4311_v7 }
 0x4d9   : > { %v4306_v34 = vpop.permute.xlu0 %4305 }
 0x4da   : > { %v4308_v21 = vunpack.i.h.bf16 %v4306_v34  ;;  %v4307_v62 = vunpack.i.l.bf16 %v4306_v34 }
 0x4dc   : > { %v3234_v46 = vsel %vm405_vm0, %v3148_v57, %v4308_v21  ;;  %v3237_v47 = vsel %vm405_vm0, %v3190_v11, %v4307_v62 }
 0x4dd   : > { %v3235_v40 = vsel %vm2008_vm11, %v3234_v46, %v4313_v52  ;;  %v3238_v53 = vsel %vm2008_vm11, %v3237_v47, %v4312_v35 }
 0x4de   : > { %v4316_v3 = vpop.permute.xlu0 %4315 }
 0x4df   : > { %v4318_v41 = vunpack.i.h.bf16 %v4316_v3  ;;  %v4317_v31 = vunpack.i.l.bf16 %v4316_v3 }
 0x4e1   : > { %v3236_v39 = vsel %vm2017_vm12, %v3235_v40, %v4318_v41  ;;  %v3239_v59 = vsel %vm2017_vm12, %v3238_v53, %v4317_v31 }
 0x4e2   : > { %v3240_v13 = vpack.c.bf16 %v3236_v39, %v3236_v39  ;;  %v3241_v44 = vpack.c.bf16 %v3239_v59, %v3239_v59 }
 0x4e4   : > { %3423 = vmatprep.mubr.bf16.mxu1 %v3241_v44 }
 0x4e5   : > { %3424 = vmatmul.mubr.bf16.vlgmr.msra.gmra.mxu1 %v3240_v13 }
 0x526   : > { %v3465_v51 = vpop.f32.mrf.mxu0 }
 0x528   : > { %v4099_v38 = vpop.f32.mrf.mxu0 }
 0x52a   : > { %v3468_v16 = vpop.f32.mrf.mxu0 }
 0x52c   : > { %v4100_v56 = vpop.f32.mrf.mxu0 }
 0x5a5   : > { %v4025_v14 = vpop.f32.mrf.mxu1 }
 0x5a7   : > { %v4026_v22 = vpop.f32.mrf.mxu1 }
 0x5a8   : > { %v4027_v0 = vadd.f32 %v4026_v22, %v4025_v14 }
 0x5a9   : > { %v4028_v45 = vpop.f32.mrf.mxu1 }
 0x5aa   : > { %v3466_v8 = vadd.f32 %v4027_v0, %v3465_v51 }
 0x5ab   : > { %v4029_v48 = vpop.f32.mrf.mxu1 }
 0x5ac   : > { %v3477_v36 = vmul.f32 %v3910_v42, %v3466_v8 }
 0x5ae   : > { %v3482_v18 = vadd.f32 %v3911_v9, %v3477_v36 }
 0x5b0   : > { %v3483_v25 = vmax.f32 %v3482_v18, 0.0 }
 0x5b2   : > { %v3491_v24 = vrot.slane %v3483_v25, %v4615_v37 }
 0x5b4   : > { %v3492_v27 = vcombine.high %v3491_v24, %v3491_v24 }
 0x5b6   : > { %v3495_v26 = vmax.f32 %v3491_v24, %v3492_v27 }
 0x5b8   : > { %v3912_v23 = vrot.slane %v3495_v26, 9 }
 0x5ba   : > { %v3500_v30 = vmax.f32 %v3495_v26, %v3912_v23 }
 0x5bc   : > { %v3501_v4 = vpack.c.bf16 %v3500_v30, %v3500_v30 }
 0x5be   : > { %4106 = vmatmul.mubr.msk.bf16.vlgmr.msra.gmra.mxu0 %vm405_vm0, %v3501_v4 }
 0x67e   : > { %v3556_v50 = vpop.f32.mrf.mxu0 }
 0x67f   : > { %v3557_v28 = vadd.f32 %v3556_v50, %v3506_v33 }
 0x680   : > { %v4107_v37 = vpop.f32.mrf.mxu0 }
 0x681   : > { %3563 = vst.msk [vmem:[%s270_s13] sm:$0x1] %vm3562_vm1, %v3557_v28 }
 0x682   : > { %v3559_v60 = vpop.f32.mrf.mxu0 }
 0x683   : > { %4406 = shalt.err (!%p4403_p3)
}
 0x684   : > { %s4407_s19 = scalar_lea.hbm %s5677_s29, 16  ;;  %s4411_s8 = scalar_lea.hbm %s5725_s7, 32 }
 0x685   : > { %p4408_p4 = scmp.ne.s32.totalorder %s5677_s29, %s4407_s19  ;;  %p4412_p9 = scmp.lt.s32.totalorder %s5677_s29, %s5725_s7 }
 0x686   : > { %p4413_p10 = scmp.lt.s32.totalorder %s4411_s8, %s4407_s19 }
 0x687   : > { %p4409_p7 = pnand %p4408_p4, %p4540_p5 }
 0x688   : > { %p4414_p11 = por %p4413_p10, %p4412_p9 }
 0x689   : > { %p4410_p8 = pneg %p4409_p7 }
 0x68b   : > { %p4415_p12 = pnand %p4414_p11, %p4410_p8 }
 0x68d   : > { %4418 = shalt.err (!%p4415_p12)
}
 0x68e   : > { %4109 = dma.vmem_to_hbm [thread:$0]  (%p4540_p5), %s5679_s14, 16, %s5677_s29, %s3565_s15   ;;  %v4108_v1 = vpop.f32.mrf.mxu0 }
 0x68f PF: > { %p4115_p13 = scmp.ge.s32.totalorder %s4453_s27, 2  ;;  %s3589_s22 = sand.u32 1, %s4441_s24  }
 0x690   : > { %s3590_s23 = scalar_lea.sflag [#allocation3], %s3589_s22 }
 0x691   : > { %p4112_p0 = pnand %p4115_p13, %p4544_p6 }
 0x693   : > { %p4113_p1 = pneg %p4112_p0 }
 0x695   : > { %4436 = dma.done.wait (%p4113_p1), %s3590_s23, 16  }
 0x696   : > { %4438 = vsyncadd (%p4113_p1), %s3590_s23, 4294967280  ;;  %p17_p2 = scmp.ge.s32.totalorder %s4527_s30, 4   ;;  %s5734_s24 = smov %s4445_s25 }
 0x697   : > { %s5735_s25 = smov %s4449_s26  ;;  %s5736_s26 = smov %s4538_s10 }
 0x698   : > { %s5737_s27 = smov %s4527_s30  ;;  %19 = sbr.rel (!%p17_p2) target bundleno = 3 (0x3), region = 85 }
 0x69d   :  { %3594 = vsyncpa [#allocation3], 1 }
 0x69e   :  { %3596 = vsyncpa [#allocation3 + $0x1], 1 }

</bundles_post_ra>
